<compile_context>
chip_gen: v6e
topology: v6e:2x2x1
jax: 0.10.0
libtpu: 0.0.40
codegen_flags: <defaults>
</compile_context>

<pallas_src>
import math

import numpy as np

import jax
import jax.numpy as jnp
from jax import lax
from jax.experimental import pallas as pl
from jax.experimental.pallas import tpu as pltpu


# ------------------------------ Pallas kernel -------------------------------

def basic_block_kernel(x_ref, w1_ref, b1_ref, w2_ref, b2_ref, o_ref,
                       pad1_ref, pad2_ref):
    """Fused BasicBlock forward for one image (grid iterates over batch).

    x_ref : [H, W*C]        lane-dense input slab (f32)
    w1_ref: [3, W*C, W*C]   conv1 weights (BN1 folded; horizontal taps and
                            horizontal zero-padding baked into a block-banded
                            matrix; leading dim = vertical tap kh)
    b1_ref: [1, W*C]        BN1 folded bias, pre-tiled to lane layout (f32)
    w2_ref: [3, W*C, W*C]   conv2 weights (BN2 folded)
    b2_ref: [1, W*C]        BN2 folded bias (f32)
    o_ref : [H, W*C]        lane-dense output slab (f32)
    pad1_ref, pad2_ref:     VMEM scratch [H+2, W*C] (vertically padded acts)
    """
    h, wc = x_ref.shape

    def fill_padded(pad_ref, interior):
        # Zero only the 1-row top/bottom halo; the interior is fully
        # overwritten right after (horizontal padding lives in the weights).
        zero_row = jnp.zeros((1, wc), pad_ref.dtype)
        pad_ref[0:1, :] = zero_row
        pad_ref[h + 1:h + 2, :] = zero_row
        pad_ref[1:h + 1, :] = interior.astype(pad_ref.dtype)

    def conv3x3(pad_ref, w_ref, b_ref):
        # Three deep matmuls, one per vertical tap; the kh shift is a pure
        # sublane-window slice.  f32 accumulation, f32 bias add.
        acc = jnp.zeros((h, w_ref.shape[2]), jnp.float32)
        for kh in range(3):                      # 3 static iters, tiny live set
            lhs = pad_ref[kh:kh + h, :]
            if lhs.dtype != w_ref.dtype:
                lhs = lhs.astype(w_ref.dtype)    # bf16 matmul operands if requested
            acc = acc + jnp.dot(lhs, w_ref[kh],
                                preferred_element_type=jnp.float32)
        return acc + b_ref[...]

    x = x_ref[...]                               # [H, W*C] f32 (kept for shortcut)

    # conv1 (+ folded bn1) + ReLU
    fill_padded(pad1_ref, x)
    y1 = jnp.maximum(conv3x3(pad1_ref, w1_ref, b1_ref), 0.0)

    # conv2 (+ folded bn2)
    fill_padded(pad2_ref, y1)
    y2 = conv3x3(pad2_ref, w2_ref, b2_ref)

    # identity shortcut add + final ReLU (f32 epilogue, lane-dense store)
    o_ref[...] = jnp.maximum(y2 + x, 0.0)


# ------------------------------ host wrapper ---------------------------------

def basic_block_forward(x_nchw, kernel_params):
    """x_nchw: [B, C, H, W] float32. Returns [B, C, H, W] float32."""
    w1p, b1p, w2p, b2p = kernel_params
    B, C, H, W = x_nchw.shape
    WC = W * C
    assert w1p.shape == (3, WC, WC) and w2p.shape == (3, WC, WC), \
        "weights must be packed for this (W, C); identity shortcut needs in_planes == planes"

    # One boundary transpose + free contiguous reshape to the lane-dense slab.
    # Note: when chaining blocks in a full ResNet keep this [B, H, W*C] layout
    # as the inter-block format and only transpose at model entry/exit.
    x3d = jnp.transpose(x_nchw, (0, 2, 3, 1)).reshape(B, H, WC)

    flops = int(B * 2 * 3 * 2 * H * WC * WC)          # 2 convs x 3 matmuls each
    bytes_accessed = int(
        sum(int(np.prod(a.shape)) * a.dtype.itemsize
            for a in (x3d, w1p, b1p, w2p, b2p)) + B * H * WC * 4)

    out3d = pl.pallas_call(
        basic_block_kernel,
        out_shape=jax.ShapeDtypeStruct((B, H, WC), jnp.float32),
        grid=(B,),
        in_specs=[
            pl.BlockSpec((None, H, WC), lambda b: (b, 0, 0)),   # per-image slab
            pl.BlockSpec((3, WC, WC), lambda b: (0, 0, 0)),     # resident weights
            pl.BlockSpec((1, WC), lambda b: (0, 0)),
            pl.BlockSpec((3, WC, WC), lambda b: (0, 0, 0)),
            pl.BlockSpec((1, WC), lambda b: (0, 0)),
        ],
        out_specs=pl.BlockSpec((None, H, WC), lambda b: (b, 0, 0)),
        scratch_shapes=[
            pltpu.VMEM((H + 2, WC), jnp.float32),
            pltpu.VMEM((H + 2, WC), jnp.float32),
        ],
        compiler_params=pltpu.CompilerParams(
            dimension_semantics=("parallel",)),
        cost_estimate=pl.CostEstimate(flops=flops, transcendentals=0,
                                      bytes_accessed=bytes_accessed),
    )(x3d, w1p, b1p, w2p, b2p)

    return jnp.transpose(out3d.reshape(B, H, W, C), (0, 3, 1, 2))


# --------------------- one-time parameter preparation ------------------------

def fold_bn_pack_conv(w_oihw, gamma, beta, mean, var, *, width, eps=1e-5,
                      w_dtype=jnp.float32):
    """Fold inference-mode BN into a bias-free 3x3 conv and pack it for the
    lane-dense kernel.

    Returns:
      G    [3, width*Cin, width*Cout]: block-banded weight; G[kh] maps an
           input row slab to an output row slab.  Horizontal taps and the
           horizontal zero-padding are encoded in the band structure.
      bias [1, width*Cout]: BN bias tiled to the lane layout (always f32).
    """
    w = np.asarray(w_oihw, np.float32)                    # [Cout, Cin, 3, 3]
    gamma = np.asarray(gamma, np.float32)
    beta = np.asarray(beta, np.float32)
    mean = np.asarray(mean, np.float32)
    var = np.asarray(var, np.float32)
    cout, cin, kh, kw = w.shape
    assert kh == 3 and kw == 3
    scale = gamma / np.sqrt(var + eps)                    # [Cout]
    w_f = w * scale[:, None, None, None]
    bias = beta - scale * mean

    G = np.zeros((3, width * cin, width * cout), np.float32)
    for k in range(3):                                    # horizontal tap kw
        blk = np.transpose(w_f[:, :, :, k], (2, 1, 0))    # [3(kh), Cin, Cout]
        for j in range(width):                            # output column
            jin = j + k - 1                               # input column (padding=1)
            if 0 <= jin < width:
                G[:, jin * cin:(jin + 1) * cin, j * cout:(j + 1) * cout] = blk
    bias_lane = np.tile(bias, width).reshape(1, width * cout)
    return jnp.asarray(G, dtype=w_dtype), jnp.asarray(bias_lane, dtype=jnp.float32)


def prepare_params(w1, g1, bb1, m1, v1, w2, g2, bb2, m2, v2, *, width,
                   eps=1e-5, w_dtype=jnp.float32):
    w1p, b1p = fold_bn_pack_conv(w1, g1, bb1, m1, v1, width=width, eps=eps,
                                 w_dtype=w_dtype)
    w2p, b2p = fold_bn_pack_conv(w2, g2, bb2, m2, v2, width=width, eps=eps,
                                 w_dtype=w_dtype)
    return w1p, b1p, w2p, b2p


# ---------------------------- pure-JAX reference -----------------------------

def forward_reference(x, raw_params, eps=1e-5):
    w1, g1, bb1, m1, v1, w2, g2, bb2, m2, v2 = raw_params
    dn = ('NCHW', 'OIHW', 'NCHW')

    def bn(y, g, b, m, v):
        inv = g / jnp.sqrt(v + eps)
        return y * inv[None, :, None, None] + (b - m * inv)[None, :, None, None]

    y = lax.conv_general_dilated(x, w1, (1, 1), ((1, 1), (1, 1)),
                                 dimension_numbers=dn)
    y = jnp.maximum(bn(y, g1, bb1, m1, v1), 0.0)
    y = lax.conv_general_dilated(y, w2, (1, 1), ((1, 1), (1, 1)),
                                 dimension_numbers=dn)
    y = bn(y, g2, bb2, m2, v2)
    return jnp.maximum(y + x, 0.0)     # identity shortcut (stride=1, in==out)


# ----------------------------------- main -------------------------------------

if __name__ == "__main__":
    B, PLANES, H, W = 2, 16, 16, 16     # in_planes == planes, stride=1 (default)
    EPS = 1e-5

    key = jax.random.PRNGKey(0)
    ks = jax.random.split(key, 11)

    def conv_init(k, shape):
        fan_in = shape[1] * shape[2] * shape[3]
        bound = 1.0 / math.sqrt(fan_in)
        return jax.random.uniform(k, shape, jnp.float32, -bound, bound)

    w1 = conv_init(ks[0], (PLANES, PLANES, 3, 3))
    w2 = conv_init(ks[1], (PLANES, PLANES, 3, 3))
    g1 = jax.random.uniform(ks[2], (PLANES,), jnp.float32, 0.5, 1.5)
    bb1 = jax.random.uniform(ks[3], (PLANES,), jnp.float32, -0.5, 0.5)
    m1 = jax.random.uniform(ks[4], (PLANES,), jnp.float32, -0.5, 0.5)
    v1 = jax.random.uniform(ks[5], (PLANES,), jnp.float32, 0.5, 1.5)
    g2 = jax.random.uniform(ks[6], (PLANES,), jnp.float32, 0.5, 1.5)
    bb2 = jax.random.uniform(ks[7], (PLANES,), jnp.float32, -0.5, 0.5)
    m2 = jax.random.uniform(ks[8], (PLANES,), jnp.float32, -0.5, 0.5)
    v2 = jax.random.uniform(ks[9], (PLANES,), jnp.float32, 0.5, 1.5)
    x = jax.random.normal(ks[10], (B, PLANES, H, W), jnp.float32)

    raw_params = (w1, g1, bb1, m1, v1, w2, g2, bb2, m2, v2)
    ref = jax.block_until_ready(forward_reference(x, raw_params, eps=EPS))

    fwd = jax.jit(basic_block_forward)

    # f32 weights: tight check against the XLA reference.
    params_f32 = prepare_params(*raw_params, width=W, eps=EPS,
                                w_dtype=jnp.float32)
    out_f32 = jax.block_until_ready(fwd(x, params_f32))
    assert out_f32.shape == (B, PLANES, H, W), out_f32.shape
    err_f32 = jnp.max(jnp.abs(out_f32 - ref))
    assert jnp.allclose(out_f32, ref, rtol=1e-3, atol=1e-3), \
        f"f32 max abs err {err_f32}"

    # bf16 matmul operands (f32 accumulate + f32 epilogue): loose sanity check.
    params_bf16 = prepare_params(*raw_params, width=W, eps=EPS,
                                 w_dtype=jnp.bfloat16)
    out_bf16 = jax.block_until_ready(fwd(x, params_bf16))
    err_bf16 = jnp.max(jnp.abs(out_bf16 - ref))
    assert jnp.allclose(out_bf16, ref, rtol=1e-1, atol=1e-1), \
        f"bf16 max abs err {err_bf16}"

    print("KERNEL_OK")
</pallas_src>

<mosaic_0001>
module attributes {stable_mosaic.version = 11 : i64} {
  func.func @basic_block_kernel(%arg0: i32, %arg1: memref<1x16x256xf32, #tpu.memory_space<vmem>>, %arg2: memref<3x256x256xf32, #tpu.memory_space<vmem>>, %arg3: memref<1x256xf32, #tpu.memory_space<vmem>>, %arg4: memref<3x256x256xf32, #tpu.memory_space<vmem>>, %arg5: memref<1x256xf32, #tpu.memory_space<vmem>>, %arg6: memref<1x16x256xf32, #tpu.memory_space<vmem>>, %arg7: memref<18x256xf32, #tpu.memory_space<vmem>>, %arg8: memref<18x256xf32, #tpu.memory_space<vmem>>) attributes {dimension_semantics = [#tpu.dimension_semantics<parallel>], iteration_bounds = array<i64: 2>, scalar_prefetch = 0 : i64, scratch_operands = 2 : i64, tpu.core_type = #tpu.core_type<tc>, window_params = [{transform_indices = @transform_0, window_bounds = array<i64: 1, 16, 256>}, {pipeline_mode = #tpu.pipeline_mode<synchronous>, transform_indices = @transform_1, window_bounds = array<i64: 3, 256, 256>}, {pipeline_mode = #tpu.pipeline_mode<synchronous>, transform_indices = @transform_2, window_bounds = array<i64: 1, 256>}, {pipeline_mode = #tpu.pipeline_mode<synchronous>, transform_indices = @transform_3, window_bounds = array<i64: 3, 256, 256>}, {pipeline_mode = #tpu.pipeline_mode<synchronous>, transform_indices = @transform_4, window_bounds = array<i64: 1, 256>}, {transform_indices = @transform_5, window_bounds = array<i64: 1, 16, 256>}]} {
    %c0 = arith.constant 0 : index
    %c0_0 = arith.constant 0 : index
    %c0_1 = arith.constant 0 : index
    %0 = vector.load %arg1[%c0, %c0_0, %c0_1] : memref<1x16x256xf32, #tpu.memory_space<vmem>>, vector<1x16x256xf32>
    %1 = vector.shape_cast %0 : vector<1x16x256xf32> to vector<16x256xf32>
    %cst = arith.constant 0.000000e+00 : f32
    %2 = vector.broadcast %cst : f32 to vector<1x256xf32>
    %c0_2 = arith.constant 0 : index
    %c0_3 = arith.constant 0 : index
    %3 = vector.load %arg7[%c0_2, %c0_3] : memref<18x256xf32, #tpu.memory_space<vmem>>, vector<1x256xf32>
    tpu.vector_store %arg7[%c0_2, %c0_3], %2 {strides = array<i32>} : memref<18x256xf32, #tpu.memory_space<vmem>>, vector<1x256xf32>,
    %c17 = arith.constant 17 : index
    %c0_4 = arith.constant 0 : index
    %4 = vector.load %arg7[%c17, %c0_4] : memref<18x256xf32, #tpu.memory_space<vmem>>, vector<1x256xf32>
    tpu.vector_store %arg7[%c17, %c0_4], %2 {strides = array<i32>} : memref<18x256xf32, #tpu.memory_space<vmem>>, vector<1x256xf32>,
    %c1 = arith.constant 1 : index
    %c0_5 = arith.constant 0 : index
    %5 = vector.load %arg7[%c1, %c0_5] : memref<18x256xf32, #tpu.memory_space<vmem>>, vector<16x256xf32>
    tpu.vector_store %arg7[%c1, %c0_5], %1 {strides = array<i32>} : memref<18x256xf32, #tpu.memory_space<vmem>>, vector<16x256xf32>,
    %cst_6 = arith.constant 0.000000e+00 : f32
    %6 = vector.broadcast %cst_6 : f32 to vector<16x256xf32>
    %c0_7 = arith.constant 0 : index
    %c0_8 = arith.constant 0 : index
    %7 = vector.load %arg7[%c0_7, %c0_8] : memref<18x256xf32, #tpu.memory_space<vmem>>, vector<16x256xf32>
    %c0_9 = arith.constant 0 : index
    %c0_10 = arith.constant 0 : index
    %c0_11 = arith.constant 0 : index
    %8 = vector.load %arg2[%c0_9, %c0_10, %c0_11] : memref<3x256x256xf32, #tpu.memory_space<vmem>>, vector<1x256x256xf32>
    %9 = vector.shape_cast %8 : vector<1x256x256xf32> to vector<256x256xf32>
    %cst_12 = arith.constant dense<0.000000e+00> : vector<16x256xf32>
    %10 = tpu.matmul %7, %9, %cst_12 {dimension_numbers = #tpu.dot_dimension_numbers<[1], [0], [0], [1], [0, 0, 1, 1], [], []>} : vector<16x256xf32>, vector<256x256xf32>, vector<16x256xf32> -> vector<16x256xf32>
    %11 = arith.addf %6, %10 : vector<16x256xf32>
    %c1_13 = arith.constant 1 : index
    %c0_14 = arith.constant 0 : index
    %12 = vector.load %arg7[%c1_13, %c0_14] : memref<18x256xf32, #tpu.memory_space<vmem>>, vector<16x256xf32>
    %c1_15 = arith.constant 1 : index
    %c0_16 = arith.constant 0 : index
    %c0_17 = arith.constant 0 : index
    %13 = vector.load %arg2[%c1_15, %c0_16, %c0_17] : memref<3x256x256xf32, #tpu.memory_space<vmem>>, vector<1x256x256xf32>
    %14 = vector.shape_cast %13 : vector<1x256x256xf32> to vector<256x256xf32>
    %cst_18 = arith.constant dense<0.000000e+00> : vector<16x256xf32>
    %15 = tpu.matmul %12, %14, %cst_18 {dimension_numbers = #tpu.dot_dimension_numbers<[1], [0], [0], [1], [0, 0, 1, 1], [], []>} : vector<16x256xf32>, vector<256x256xf32>, vector<16x256xf32> -> vector<16x256xf32>
    %16 = arith.addf %11, %15 : vector<16x256xf32>
    %c2 = arith.constant 2 : index
    %c0_19 = arith.constant 0 : index
    %17 = vector.load %arg7[%c2, %c0_19] : memref<18x256xf32, #tpu.memory_space<vmem>>, vector<16x256xf32>
    %c2_20 = arith.constant 2 : index
    %c0_21 = arith.constant 0 : index
    %c0_22 = arith.constant 0 : index
    %18 = vector.load %arg2[%c2_20, %c0_21, %c0_22] : memref<3x256x256xf32, #tpu.memory_space<vmem>>, vector<1x256x256xf32>
    %19 = vector.shape_cast %18 : vector<1x256x256xf32> to vector<256x256xf32>
    %cst_23 = arith.constant dense<0.000000e+00> : vector<16x256xf32>
    %20 = tpu.matmul %17, %19, %cst_23 {dimension_numbers = #tpu.dot_dimension_numbers<[1], [0], [0], [1], [0, 0, 1, 1], [], []>} : vector<16x256xf32>, vector<256x256xf32>, vector<16x256xf32> -> vector<16x256xf32>
    %21 = arith.addf %16, %20 : vector<16x256xf32>
    %c0_24 = arith.constant 0 : index
    %c0_25 = arith.constant 0 : index
    %22 = vector.load %arg3[%c0_24, %c0_25] : memref<1x256xf32, #tpu.memory_space<vmem>>, vector<1x256xf32>
    %23 = vector.broadcast %22 : vector<1x256xf32> to vector<16x256xf32>
    %24 = arith.addf %21, %23 : vector<16x256xf32>
    %cst_26 = arith.constant 0.000000e+00 : f32
    %25 = vector.broadcast %cst_26 : f32 to vector<16x256xf32>
    %26 = arith.maximumf %24, %25 : vector<16x256xf32>
    %cst_27 = arith.constant 0.000000e+00 : f32
    %27 = vector.broadcast %cst_27 : f32 to vector<1x256xf32>
    %c0_28 = arith.constant 0 : index
    %c0_29 = arith.constant 0 : index
    %28 = vector.load %arg8[%c0_28, %c0_29] : memref<18x256xf32, #tpu.memory_space<vmem>>, vector<1x256xf32>
    tpu.vector_store %arg8[%c0_28, %c0_29], %27 {strides = array<i32>} : memref<18x256xf32, #tpu.memory_space<vmem>>, vector<1x256xf32>,
    %c17_30 = arith.constant 17 : index
    %c0_31 = arith.constant 0 : index
    %29 = vector.load %arg8[%c17_30, %c0_31] : memref<18x256xf32, #tpu.memory_space<vmem>>, vector<1x256xf32>
    tpu.vector_store %arg8[%c17_30, %c0_31], %27 {strides = array<i32>} : memref<18x256xf32, #tpu.memory_space<vmem>>, vector<1x256xf32>,
    %c1_32 = arith.constant 1 : index
    %c0_33 = arith.constant 0 : index
    %30 = vector.load %arg8[%c1_32, %c0_33] : memref<18x256xf32, #tpu.memory_space<vmem>>, vector<16x256xf32>
    tpu.vector_store %arg8[%c1_32, %c0_33], %26 {strides = array<i32>} : memref<18x256xf32, #tpu.memory_space<vmem>>, vector<16x256xf32>,
    %cst_34 = arith.constant 0.000000e+00 : f32
    %31 = vector.broadcast %cst_34 : f32 to vector<16x256xf32>
    %c0_35 = arith.constant 0 : index
    %c0_36 = arith.constant 0 : index
    %32 = vector.load %arg8[%c0_35, %c0_36] : memref<18x256xf32, #tpu.memory_space<vmem>>, vector<16x256xf32>
    %c0_37 = arith.constant 0 : index
    %c0_38 = arith.constant 0 : index
    %c0_39 = arith.constant 0 : index
    %33 = vector.load %arg4[%c0_37, %c0_38, %c0_39] : memref<3x256x256xf32, #tpu.memory_space<vmem>>, vector<1x256x256xf32>
    %34 = vector.shape_cast %33 : vector<1x256x256xf32> to vector<256x256xf32>
    %cst_40 = arith.constant dense<0.000000e+00> : vector<16x256xf32>
    %35 = tpu.matmul %32, %34, %cst_40 {dimension_numbers = #tpu.dot_dimension_numbers<[1], [0], [0], [1], [0, 0, 1, 1], [], []>} : vector<16x256xf32>, vector<256x256xf32>, vector<16x256xf32> -> vector<16x256xf32>
    %36 = arith.addf %31, %35 : vector<16x256xf32>
    %c1_41 = arith.constant 1 : index
    %c0_42 = arith.constant 0 : index
    %37 = vector.load %arg8[%c1_41, %c0_42] : memref<18x256xf32, #tpu.memory_space<vmem>>, vector<16x256xf32>
    %c1_43 = arith.constant 1 : index
    %c0_44 = arith.constant 0 : index
    %c0_45 = arith.constant 0 : index
    %38 = vector.load %arg4[%c1_43, %c0_44, %c0_45] : memref<3x256x256xf32, #tpu.memory_space<vmem>>, vector<1x256x256xf32>
    %39 = vector.shape_cast %38 : vector<1x256x256xf32> to vector<256x256xf32>
    %cst_46 = arith.constant dense<0.000000e+00> : vector<16x256xf32>
    %40 = tpu.matmul %37, %39, %cst_46 {dimension_numbers = #tpu.dot_dimension_numbers<[1], [0], [0], [1], [0, 0, 1, 1], [], []>} : vector<16x256xf32>, vector<256x256xf32>, vector<16x256xf32> -> vector<16x256xf32>
    %41 = arith.addf %36, %40 : vector<16x256xf32>
    %c2_47 = arith.constant 2 : index
    %c0_48 = arith.constant 0 : index
    %42 = vector.load %arg8[%c2_47, %c0_48] : memref<18x256xf32, #tpu.memory_space<vmem>>, vector<16x256xf32>
    %c2_49 = arith.constant 2 : index
    %c0_50 = arith.constant 0 : index
    %c0_51 = arith.constant 0 : index
    %43 = vector.load %arg4[%c2_49, %c0_50, %c0_51] : memref<3x256x256xf32, #tpu.memory_space<vmem>>, vector<1x256x256xf32>
    %44 = vector.shape_cast %43 : vector<1x256x256xf32> to vector<256x256xf32>
    %cst_52 = arith.constant dense<0.000000e+00> : vector<16x256xf32>
    %45 = tpu.matmul %42, %44, %cst_52 {dimension_numbers = #tpu.dot_dimension_numbers<[1], [0], [0], [1], [0, 0, 1, 1], [], []>} : vector<16x256xf32>, vector<256x256xf32>, vector<16x256xf32> -> vector<16x256xf32>
    %46 = arith.addf %41, %45 : vector<16x256xf32>
    %c0_53 = arith.constant 0 : index
    %c0_54 = arith.constant 0 : index
    %47 = vector.load %arg5[%c0_53, %c0_54] : memref<1x256xf32, #tpu.memory_space<vmem>>, vector<1x256xf32>
    %48 = vector.broadcast %47 : vector<1x256xf32> to vector<16x256xf32>
    %49 = arith.addf %46, %48 : vector<16x256xf32>
    %50 = arith.addf %49, %1 : vector<16x256xf32>
    %cst_55 = arith.constant 0.000000e+00 : f32
    %51 = vector.broadcast %cst_55 : f32 to vector<16x256xf32>
    %52 = arith.maximumf %50, %51 : vector<16x256xf32>
    %c0_56 = arith.constant 0 : index
    %c0_57 = arith.constant 0 : index
    %c0_58 = arith.constant 0 : index
    %53 = vector.load %arg6[%c0_56, %c0_57, %c0_58] : memref<1x16x256xf32, #tpu.memory_space<vmem>>, vector<1x16x256xf32>
    %54 = vector.shape_cast %53 : vector<1x16x256xf32> to vector<16x256xf32>
    %55 = vector.shape_cast %52 : vector<16x256xf32> to vector<1x16x256xf32>
    tpu.vector_store %arg6[%c0_56, %c0_57, %c0_58], %55 {strides = array<i32>} : memref<1x16x256xf32, #tpu.memory_space<vmem>>, vector<1x16x256xf32>,
    return
  }
  func.func @transform_0(%arg0: i32) -> (i32, i32, i32) {
    %c0_i32 = arith.constant 0 : i32
    %c0_i32_0 = arith.constant 0 : i32
    %c0_i32_1 = arith.constant 0 : i32
    return %arg0, %c0_i32, %c0_i32_0 : i32, i32, i32
  }
  func.func @transform_1(%arg0: i32) -> (i32, i32, i32) {
    %c0_i32 = arith.constant 0 : i32
    %c0_i32_0 = arith.constant 0 : i32
    %c0_i32_1 = arith.constant 0 : i32
    %c0_i32_2 = arith.constant 0 : i32
    return %c0_i32, %c0_i32_0, %c0_i32_1 : i32, i32, i32
  }
  func.func @transform_2(%arg0: i32) -> (i32, i32) {
    %c0_i32 = arith.constant 0 : i32
    %c0_i32_0 = arith.constant 0 : i32
    %c0_i32_1 = arith.constant 0 : i32
    return %c0_i32, %c0_i32_0 : i32, i32
  }
  func.func @transform_3(%arg0: i32) -> (i32, i32, i32) {
    %c0_i32 = arith.constant 0 : i32
    %c0_i32_0 = arith.constant 0 : i32
    %c0_i32_1 = arith.constant 0 : i32
    %c0_i32_2 = arith.constant 0 : i32
    return %c0_i32, %c0_i32_0, %c0_i32_1 : i32, i32, i32
  }
  func.func @transform_4(%arg0: i32) -> (i32, i32) {
    %c0_i32 = arith.constant 0 : i32
    %c0_i32_0 = arith.constant 0 : i32
    %c0_i32_1 = arith.constant 0 : i32
    return %c0_i32, %c0_i32_0 : i32, i32
  }
  func.func @transform_5(%arg0: i32) -> (i32, i32, i32) {
    %c0_i32 = arith.constant 0 : i32
    %c0_i32_0 = arith.constant 0 : i32
    %c0_i32_1 = arith.constant 0 : i32
    return %arg0, %c0_i32, %c0_i32_0 : i32, i32, i32
  }
}

</mosaic_0001>

<bundles_post_ra>
// kernel: basic_block_forward.1
= control target key start
LH: loop header
LB: loop body
LE: loop exit
PB: predicated region body
PF: predicated region fallthrough
CT: control target
= control target key end

     0   :  { %10 = vsyncpa [#allocation5], 0  ;;  %s1619_s18 = smov 0   ;;  %s2321_s0 = inlined_call_operand.vmem [shape: f32[2,16,256], index: 0, kind: input, shape index: {}]   ;;  %s2322_s1 = inlined_call_operand.vmem [shape: f32[3,256,256], index: 1, kind: input, shape index: {}]   ;;  %s2323_s2 = inlined_call_operand.vmem [shape: f32[1,256], index: 2, kind: input, shape index: {}]   ;;  %s2324_s3 = inlined_call_operand.hbm [shape: f32[3,256,256], index: 3, kind: input, shape index: {}]   ;;  %s2325_s4 = inlined_call_operand.vmem [shape: f32[1,256], index: 4, kind: input, shape index: {}]   ;;  %s2326_s5 = inlined_call_operand.vmem [shape: f32[2,16,256], index: 5, kind: output, shape index: {}]  }
   0x1 LB: > { %s1625_s19 = sadd.s32 4294967295, %s1583_s18   ;;  %p1380_p0 = scmp.ge.s32.totalorder %s1583_s18, 1  ;;  %s1583_s18 = sphi %s1619_s18, %s16_s18  }
   0x2   : > { %p157_p1 = scmp.lt.s32.totalorder %s1583_s18, 3  ;;  %s1585_s20 = smov [#allocation4]  }
   0x3   : > { %s175_s21 = sshll.u32 %s1585_s20, 4  ;;  %p1529_p3 = scmp.eq.s32.totalorder %s1625_s19, 0  ;;  %s176_s21 = int_to_ptr.vmem [resolvable:$true] %s175_s21 }
   0x4   : > { %p1629_p2 = pnand %p1380_p0, %p157_p1  ;;  %s1558_s23 = scalar_lea.vmem %s176_s21, 24576 }
   0x5   : > { %p1559_p7 = scmp.ne.s32.totalorder %s176_s21, %s1558_s23  ;;  %p1566_p10 = scmp.lt.s32.totalorder %s176_s21, %s176_s21 }
   0x6   : > { %p1525_p4 = pneg %p1629_p2  ;;  %p1567_p11 = scmp.lt.s32.totalorder %s1558_s23, %s1558_s23 }
   0x8   : > { %p1526_p5 = pnand %p1529_p3, %p1525_p4  ;;  %p1568_p12 = por %p1567_p11, %p1566_p10 }
   0xa   : > { %p1549_p6 = pneg %p1526_p5 }
   0xc   : > { %p1561_p8 = pnand %p1559_p7, %p1549_p6 }
   0xe   : > { %p1562_p9 = pneg %p1561_p8 }
  0x10   : > { %p1569_p13 = pnand %p1568_p12, %p1562_p9 }
  0x12   : > { %1572 = shalt.err (!%p1569_p13)
}
  0x13   : > { %s1586_s24 = smov 256   ;;  %s1587_s25 = smov 16  }
  0x14   : > { %1528 = dma.hbm_to_vmem [thread:$0]  (!%p1526_p5), %s2324_s3, 24576, %s176_s21, [#allocation5], %s1586_s24, %s1586_s24, %s1587_s25  }
  0x15   : > { %202 = sbr.rel (%p1629_p2) target bundleno = 647 (0x287), region = 40 }
  0x1a   : > { %1578 = dma.done.wait (%p1529_p3), [#allocation5], 24576  }
  0x1b   : > { %1580 = vsyncadd (%p1529_p3), [#allocation5], 4294942720  ;;  %v244_v0 = vlaneseq  ;;  %v1588_v1 = vmov 0.0   ;;  %v1420_v2 = vld [vmem:[%s2322_s1 + $0x2f8] sm:$0xff]  ;;  %v1419_v4 = vld [vmem:[%s2322_s1 + $0x2f0] sm:$0xff]  ;;  %p230_p0 = scmp.lt.s32.totalorder %s1625_s19, 1 }
  0x1c   : > { %v311_v3 = vld [vmem:[%s2322_s1 + $0xf8] sm:$0xff]  ;;  %434 = vmatprep.subr.mxu0 %v1420_v2  ;;  %v310_v5 = vld [vmem:[%s2322_s1 + $0xf0] sm:$0xff]  ;;  %v1418_v6 = vld [vmem:[%s2322_s1 + $0x2e8] sm:$0xff]  ;;  %vm257_vm1 = vcmask 1040384   ;;  %vm419_vm2 = vcmask 1046528   ;;  %vm661_vm3 = vcmask 1045504  }
  0x1d   : > { %vm246_vm0 = vcmp.lt.s32.totalorder %v244_v0, 256  ;;  %511 = vmatprep.subr.mxu1 %v311_v3  ;;  %v309_v7 = vld [vmem:[%s2322_s1 + $0xe8] sm:$0xff]  ;;  %435 = vmatpush1.msra.mxu0 %v1419_v4  ;;  %v1417_v8 = vld [vmem:[%s2322_s1 + $0x2e0] sm:$0xff]  ;;  %v1416_v10 = vld [vmem:[%s2322_s1 + $0x2d8] sm:$0xff]  ;;  %s2329_s19 = smov (!%p230_p0, %s1625_s19), 1 }
  0x1e   : > { %248 = vst.msk [vmem:[#allocation2] ss:$8 sm:$0x3] %vm246_vm0, %v1588_v1  ;;  %251 = vst.msk [vmem:[#allocation2 + $0x21] ss:$8 sm:$0x3] %vm246_vm0, %v1588_v1  ;;  %512 = vmatpush1.msra.mxu1 %v310_v5  ;;  %436 = vmatprep.subr.mxu0 %v1418_v6 }
  0x1f   : > { %777 = vst.msk [vmem:[#allocation3] ss:$8 sm:$0x3] %vm246_vm0, %v1588_v1  ;;  %780 = vst.msk [vmem:[#allocation3 + $0x21] ss:$8 sm:$0x3] %vm246_vm0, %v1588_v1  ;;  %513 = vmatprep.subr.mxu1 %v309_v7  ;;  %437 = vmatpush1.msra.mxu0 %v1417_v8 }
  0x20   : > { %v308_v9 = vld [vmem:[%s2322_s1 + $0xe0] sm:$0xff]  ;;  %v307_v11 = vld [vmem:[%s2322_s1 + $0xd8] sm:$0xff]  ;;  %v1415_v12 = vld [vmem:[%s2322_s1 + $0x2d0] sm:$0xff]  ;;  %438 = vmatprep.subr.mxu0 %v1416_v10  ;;  %s1519_s23 = sshll.u32 %s2329_s19, 5 }
  0x21   : > { %v306_v13 = vld [vmem:[%s2322_s1 + $0xd0] sm:$0xff]  ;;  %514 = vmatpush1.msra.mxu1 %v308_v9  ;;  %v1414_v14 = vld [vmem:[%s2322_s1 + $0x2c8] sm:$0xff]  ;;  %v1413_v16 = vld [vmem:[%s2322_s1 + $0x2c0] sm:$0xff]  ;;  %439 = vmatpush1.msra.mxu0 %v1415_v12  ;;  %s1912_s13 = scalar_lea.vmem %s2321_s0, %s1519_s23  ;;  %s239_s29 = scalar_lea.vmem %s2326_s5, %s1519_s23 }
  0x22   : > { %v305_v15 = vld [vmem:[%s2322_s1 + $0xc8] sm:$0xff]  ;;  %515 = vmatprep.subr.mxu1 %v307_v11  ;;  %v304_v17 = vld [vmem:[%s2322_s1 + $0xc0] sm:$0xff]  ;;  %v1412_v18 = vld [vmem:[%s2322_s1 + $0x2b8] sm:$0xff]  ;;  %440 = vmatprep.subr.mxu0 %v1414_v14 }
  0x23   : > { %516 = vmatpush1.msra.mxu1 %v306_v13  ;;  %v303_v19 = vld [vmem:[%s2322_s1 + $0xb8] sm:$0xff]  ;;  %v1411_v20 = vld [vmem:[%s2322_s1 + $0x2b0] sm:$0xff]  ;;  %441 = vmatpush1.msra.mxu0 %v1413_v16  ;;  %v1410_v22 = vld [vmem:[%s2322_s1 + $0x2a8] sm:$0xff] }
  0x24   : > { %517 = vmatprep.subr.mxu1 %v305_v15  ;;  %v302_v21 = vld [vmem:[%s2322_s1 + $0xb0] sm:$0xff]  ;;  %v301_v23 = vld [vmem:[%s2322_s1 + $0xa8] sm:$0xff]  ;;  %442 = vmatprep.subr.mxu0 %v1412_v18  ;;  %v1409_v24 = vld [vmem:[%s2322_s1 + $0x2a0] sm:$0xff] }
  0x25   : > { %518 = vmatpush1.msra.mxu1 %v304_v17  ;;  %v300_v25 = vld [vmem:[%s2322_s1 + $0xa0] sm:$0xff]  ;;  %443 = vmatpush1.msra.mxu0 %v1411_v20  ;;  %v1408_v26 = vld [vmem:[%s2322_s1 + $0x298] sm:$0xff]  ;;  %v1407_v28 = vld [vmem:[%s2322_s1 + $0x290] sm:$0xff] }
  0x26   : > { %519 = vmatprep.subr.mxu1 %v303_v19  ;;  %v299_v27 = vld [vmem:[%s2322_s1 + $0x98] sm:$0xff]  ;;  %444 = vmatprep.subr.mxu0 %v1410_v22  ;;  %v298_v29 = vld [vmem:[%s2322_s1 + $0x90] sm:$0xff]  ;;  %v1406_v30 = vld [vmem:[%s2322_s1 + $0x288] sm:$0xff] }
  0x27   : > { %520 = vmatpush1.msra.mxu1 %v302_v21  ;;  %445 = vmatpush1.msra.mxu0 %v1409_v24  ;;  %v297_v31 = vld [vmem:[%s2322_s1 + $0x88] sm:$0xff]  ;;  %v1405_v32 = vld [vmem:[%s2322_s1 + $0x280] sm:$0xff]  ;;  %v1404_v34 = vld [vmem:[%s2322_s1 + $0x278] sm:$0xff] }
  0x28   : > { %521 = vmatprep.subr.mxu1 %v301_v23  ;;  %446 = vmatprep.subr.mxu0 %v1408_v26  ;;  %v296_v33 = vld [vmem:[%s2322_s1 + $0x80] sm:$0xff]  ;;  %v295_v35 = vld [vmem:[%s2322_s1 + $0x78] sm:$0xff]  ;;  %v1403_v36 = vld [vmem:[%s2322_s1 + $0x270] sm:$0xff] }
  0x29   : > { %522 = vmatpush1.msra.mxu1 %v300_v25  ;;  %447 = vmatpush1.msra.mxu0 %v1407_v28  ;;  %v294_v37 = vld [vmem:[%s2322_s1 + $0x70] sm:$0xff]  ;;  %v1402_v38 = vld [vmem:[%s2322_s1 + $0x268] sm:$0xff]  ;;  %v1401_v40 = vld [vmem:[%s2322_s1 + $0x260] sm:$0xff] }
  0x2a   : > { %523 = vmatprep.subr.mxu1 %v299_v27  ;;  %448 = vmatprep.subr.mxu0 %v1406_v30  ;;  %v293_v39 = vld [vmem:[%s2322_s1 + $0x68] sm:$0xff]  ;;  %v292_v41 = vld [vmem:[%s2322_s1 + $0x60] sm:$0xff]  ;;  %v1400_v42 = vld [vmem:[%s2322_s1 + $0x258] sm:$0xff] }
  0x2b   : > { %524 = vmatpush1.msra.mxu1 %v298_v29  ;;  %449 = vmatpush1.msra.mxu0 %v1405_v32  ;;  %v291_v43 = vld [vmem:[%s2322_s1 + $0x58] sm:$0xff]  ;;  %v1399_v44 = vld [vmem:[%s2322_s1 + $0x250] sm:$0xff]  ;;  %v1398_v46 = vld [vmem:[%s2322_s1 + $0x248] sm:$0xff] }
  0x2c   : > { %525 = vmatprep.subr.mxu1 %v297_v31  ;;  %450 = vmatprep.subr.mxu0 %v1404_v34  ;;  %v290_v45 = vld [vmem:[%s2322_s1 + $0x50] sm:$0xff]  ;;  %v289_v47 = vld [vmem:[%s2322_s1 + $0x48] sm:$0xff]  ;;  %v1397_v48 = vld [vmem:[%s2322_s1 + $0x240] sm:$0xff] }
  0x2d   : > { %526 = vmatpush1.msra.mxu1 %v296_v33  ;;  %451 = vmatpush1.msra.mxu0 %v1403_v36  ;;  %v288_v49 = vld [vmem:[%s2322_s1 + $0x40] sm:$0xff]  ;;  %v1396_v50 = vld [vmem:[%s2322_s1 + $0x238] sm:$0xff]  ;;  %v1395_v52 = vld [vmem:[%s2322_s1 + $0x230] sm:$0xff] }
  0x2e   : > { %527 = vmatprep.subr.mxu1 %v295_v35  ;;  %452 = vmatprep.subr.mxu0 %v1402_v38  ;;  %v287_v51 = vld [vmem:[%s2322_s1 + $0x38] sm:$0xff]  ;;  %v286_v53 = vld [vmem:[%s2322_s1 + $0x30] sm:$0xff]  ;;  %v1394_v54 = vld [vmem:[%s2322_s1 + $0x228] sm:$0xff] }
  0x2f   : > { %528 = vmatpush1.msra.mxu1 %v294_v37  ;;  %453 = vmatpush1.msra.mxu0 %v1401_v40  ;;  %v285_v55 = vld [vmem:[%s2322_s1 + $0x28] sm:$0xff]  ;;  %v1393_v56 = vld [vmem:[%s2322_s1 + $0x220] sm:$0xff]  ;;  %v1392_v58 = vld [vmem:[%s2322_s1 + $0x218] sm:$0xff] }
  0x30   : > { %529 = vmatprep.subr.mxu1 %v293_v39  ;;  %454 = vmatprep.subr.mxu0 %v1400_v42  ;;  %v284_v57 = vld [vmem:[%s2322_s1 + $0x20] sm:$0xff]  ;;  %v283_v59 = vld [vmem:[%s2322_s1 + $0x18] sm:$0xff]  ;;  %v1391_v60 = vld [vmem:[%s2322_s1 + $0x210] sm:$0xff] }
  0x31   : > { %530 = vmatpush1.msra.mxu1 %v292_v41  ;;  %455 = vmatpush1.msra.mxu0 %v1399_v44  ;;  %v282_v61 = vld [vmem:[%s2322_s1 + $0x10] sm:$0xff]  ;;  %v1390_v62 = vld [vmem:[%s2322_s1 + $0x208] sm:$0xff]  ;;  %v1389_v1 = vld [vmem:[%s2322_s1 + $0x200] sm:$0xff] }
  0x32   : > { %531 = vmatprep.subr.mxu1 %v291_v43  ;;  %456 = vmatprep.subr.mxu0 %v1398_v46  ;;  %v281_v63 = vld [vmem:[%s2322_s1 + $0x8] sm:$0xff]  ;;  %v280_v2 = vld [vmem:[%s2322_s1] sm:$0xff]  ;;  %v1452_v3 = vld [vmem:[%s2322_s1 + $0x3f8] sm:$0xff] }
  0x33   : > { %532 = vmatpush1.msra.mxu1 %v290_v45  ;;  %457 = vmatpush1.msra.mxu0 %v1397_v48  ;;  %v343_v4 = vld [vmem:[%s2322_s1 + $0x1f8] sm:$0xff]  ;;  %v1451_v5 = vld [vmem:[%s2322_s1 + $0x3f0] sm:$0xff]  ;;  %v1450_v7 = vld [vmem:[%s2322_s1 + $0x3e8] sm:$0xff] }
  0x34   : > { %533 = vmatprep.subr.mxu1 %v289_v47  ;;  %458 = vmatprep.subr.mxu0 %v1396_v50  ;;  %v342_v6 = vld [vmem:[%s2322_s1 + $0x1f0] sm:$0xff]  ;;  %v341_v8 = vld [vmem:[%s2322_s1 + $0x1e8] sm:$0xff]  ;;  %v1449_v9 = vld [vmem:[%s2322_s1 + $0x3e0] sm:$0xff] }
  0x35   : > { %534 = vmatpush1.msra.mxu1 %v288_v49  ;;  %459 = vmatpush1.msra.mxu0 %v1395_v52  ;;  %v340_v10 = vld [vmem:[%s2322_s1 + $0x1e0] sm:$0xff]  ;;  %v1448_v11 = vld [vmem:[%s2322_s1 + $0x3d8] sm:$0xff]  ;;  %v1447_v13 = vld [vmem:[%s2322_s1 + $0x3d0] sm:$0xff] }
  0x36   : > { %535 = vmatprep.subr.mxu1 %v287_v51  ;;  %460 = vmatprep.subr.mxu0 %v1394_v54  ;;  %v339_v12 = vld [vmem:[%s2322_s1 + $0x1d8] sm:$0xff]  ;;  %v338_v14 = vld [vmem:[%s2322_s1 + $0x1d0] sm:$0xff]  ;;  %v1446_v15 = vld [vmem:[%s2322_s1 + $0x3c8] sm:$0xff] }
  0x37   : > { %536 = vmatpush1.msra.mxu1 %v286_v53  ;;  %461 = vmatpush1.msra.mxu0 %v1393_v56  ;;  %v337_v16 = vld [vmem:[%s2322_s1 + $0x1c8] sm:$0xff]  ;;  %v1445_v17 = vld [vmem:[%s2322_s1 + $0x3c0] sm:$0xff]  ;;  %v1444_v19 = vld [vmem:[%s2322_s1 + $0x3b8] sm:$0xff] }
  0x38   : > { %537 = vmatprep.subr.mxu1 %v285_v55  ;;  %462 = vmatprep.subr.mxu0 %v1392_v58  ;;  %v336_v18 = vld [vmem:[%s2322_s1 + $0x1c0] sm:$0xff]  ;;  %v335_v20 = vld [vmem:[%s2322_s1 + $0x1b8] sm:$0xff]  ;;  %v1443_v21 = vld [vmem:[%s2322_s1 + $0x3b0] sm:$0xff] }
  0x39   : > { %538 = vmatpush1.msra.mxu1 %v284_v57  ;;  %463 = vmatpush1.msra.mxu0 %v1391_v60  ;;  %v334_v22 = vld [vmem:[%s2322_s1 + $0x1b0] sm:$0xff]  ;;  %v1442_v23 = vld [vmem:[%s2322_s1 + $0x3a8] sm:$0xff]  ;;  %v1441_v25 = vld [vmem:[%s2322_s1 + $0x3a0] sm:$0xff] }
  0x3a   : > { %539 = vmatprep.subr.mxu1 %v283_v59  ;;  %464 = vmatprep.subr.mxu0 %v1390_v62  ;;  %v333_v24 = vld [vmem:[%s2322_s1 + $0x1a8] sm:$0xff]  ;;  %v332_v26 = vld [vmem:[%s2322_s1 + $0x1a0] sm:$0xff]  ;;  %v1440_v27 = vld [vmem:[%s2322_s1 + $0x398] sm:$0xff] }
  0x3b   : > { %540 = vmatpush1.msra.mxu1 %v282_v61  ;;  %465 = vmatpush1.msra.mxu0 %v1389_v1  ;;  %v331_v28 = vld [vmem:[%s2322_s1 + $0x198] sm:$0xff]  ;;  %v1439_v29 = vld [vmem:[%s2322_s1 + $0x390] sm:$0xff]  ;;  %v241_v30 = vld [vmem:[%s1912_s13 + $0x8] sm:$0xff] }
  0x3c   : > { %541 = vmatprep.subr.mxu1 %v281_v63  ;;  %466 = vmatprep.subr.mxu0 %v1452_v3  ;;  %v243_v31 = vld [vmem:[%s1912_s13 + $0x18] sm:$0xff]  ;;  %v330_v32 = vld [vmem:[%s2322_s1 + $0x190] sm:$0xff]  ;;  %v259_v33 = vrot.slane %v241_v30, 7  ;;  %v240_v35 = vld [vmem:[%s1912_s13] sm:$0xff] }
  0x3d   : > { %542 = vmatpush1.msra.mxu1 %v280_v2  ;;  %467 = vmatpush2.msra.mxu0 %v1451_v5  ;;  %v262_v34 = vrot.slane %v243_v31, 7  ;;  %v242_v36 = vld [vmem:[%s1912_s13 + $0x10] sm:$0xff]  ;;  %v1438_v37 = vld [vmem:[%s2322_s1 + $0x388] sm:$0xff]  ;;  %v258_v39 = vrot.slane %v240_v35, 7  ;;  %v1437_v41 = vld [vmem:[%s2322_s1 + $0x380] sm:$0xff] }
  0x3e   : > { %543 = vmatprep.subr.mxu1 %v343_v4  ;;  %468 = vmatprep.subr.mxu0 %v1450_v7  ;;  %v329_v38 = vld [vmem:[%s2322_s1 + $0x188] sm:$0xff]  ;;  %v260_v40 = vrot.slane %v242_v36, 7  ;;  %v328_v42 = vld [vmem:[%s2322_s1 + $0x180] sm:$0xff]  ;;  %271 = vst [vmem:[#allocation2 + $0x8] sm:$0xfe] %v259_v33  ;;  %v1436_v44 = vld [vmem:[%s2322_s1 + $0x378] sm:$0xff] }
  0x3f   : > { %544 = vmatpush2.msra.mxu1 %v342_v6  ;;  %469 = vmatpush2.msra.mxu0 %v1449_v9  ;;  %v1955_v43 = vsel %vm257_vm1, %v259_v33, %v262_v34  ;;  %275 = vst [vmem:[#allocation2 + $0x28] sm:$0x1] %v262_v34  ;;  %v327_v45 = vld [vmem:[%s2322_s1 + $0x178] sm:$0xff]  ;;  %270 = vst [vmem:[#allocation2] sm:$0xfe] %v258_v39  ;;  %v1435_v47 = vld [vmem:[%s2322_s1 + $0x370] sm:$0xff] }
  0x40   : > { %545 = vmatprep.subr.mxu1 %v341_v8  ;;  %470 = vmatprep.subr.mxu0 %v1448_v11  ;;  %v1964_v46 = vsel %vm257_vm1, %v258_v39, %v260_v40  ;;  %274 = vst [vmem:[#allocation2 + $0x20] sm:$0x1] %v260_v40  ;;  %v326_v48 = vld [vmem:[%s2322_s1 + $0x170] sm:$0xff]  ;;  %v1434_v49 = vld [vmem:[%s2322_s1 + $0x368] sm:$0xff]  ;;  %v1433_v51 = vld [vmem:[%s2322_s1 + $0x360] sm:$0xff]  ;;  %v424_v9 = vrot.slane %v1955_v43, 1 }
  0x41   : > { %546 = vmatpush2.msra.mxu1 %v340_v10  ;;  %471 = vmatpush2.msra.mxu0 %v1447_v13  ;;  %v325_v50 = vld [vmem:[%s2322_s1 + $0x168] sm:$0xff]  ;;  %v324_v52 = vld [vmem:[%s2322_s1 + $0x160] sm:$0xff]  ;;  %v1432_v53 = vld [vmem:[%s2322_s1 + $0x358] sm:$0xff]  ;;  %v666_v31 = vrot.slane %v1955_v43, 2 }
  0x42   : > { %547 = vmatprep.subr.mxu1 %v339_v12  ;;  %472 = vmatprep.subr.mxu0 %v1446_v15  ;;  %v323_v54 = vld [vmem:[%s2322_s1 + $0x158] sm:$0xff]  ;;  %v1431_v55 = vld [vmem:[%s2322_s1 + $0x350] sm:$0xff]  ;;  %v1430_v57 = vld [vmem:[%s2322_s1 + $0x348] sm:$0xff]  ;;  %v421_v15 = vrot.slane %v1964_v46, 1 }
  0x43   : > { %548 = vmatpush2.msra.mxu1 %v338_v14  ;;  %473 = vmatpush2.msra.mxu0 %v1445_v17  ;;  %v322_v56 = vld [vmem:[%s2322_s1 + $0x150] sm:$0xff]  ;;  %v321_v58 = vld [vmem:[%s2322_s1 + $0x148] sm:$0xff]  ;;  %v1429_v59 = vld [vmem:[%s2322_s1 + $0x340] sm:$0xff] }
  0x44   : > { %549 = vmatprep.subr.mxu1 %v337_v16  ;;  %474 = vmatprep.subr.mxu0 %v1444_v19  ;;  %v320_v60 = vld [vmem:[%s2322_s1 + $0x140] sm:$0xff]  ;;  %v1428_v61 = vld [vmem:[%s2322_s1 + $0x338] sm:$0xff]  ;;  %v1427_v1 = vld [vmem:[%s2322_s1 + $0x330] sm:$0xff] }
  0x45   : > { %550 = vmatpush2.msra.mxu1 %v336_v18  ;;  %475 = vmatpush2.msra.mxu0 %v1443_v21  ;;  %v319_v62 = vld [vmem:[%s2322_s1 + $0x138] sm:$0xff]  ;;  %v345_v63 = vld [vmem:[#allocation2 + $0x8] sm:$0xfe]  ;;  %v318_v2 = vld [vmem:[%s2322_s1 + $0x130] sm:$0xff] }
  0x46   : > { %551 = vmatprep.subr.mxu1 %v335_v20  ;;  %476 = vmatprep.subr.mxu0 %v1442_v23  ;;  %v1426_v3 = vld [vmem:[%s2322_s1 + $0x328] sm:$0xff]  ;;  %v344_v5 = vld [vmem:[#allocation2] sm:$0xfe]  ;;  %v423_v8 = vrot.slane %v345_v63, 1  ;;  %v1424_v10 = vld [vmem:[%s2322_s1 + $0x318] sm:$0xff] }
  0x47   : > { %552 = vmatpush2.msra.mxu1 %v334_v22  ;;  %477 = vmatpush2.msra.mxu0 %v1441_v25  ;;  %v317_v4 = vld [vmem:[%s2322_s1 + $0x128] sm:$0xff]  ;;  %v1425_v6 = vld [vmem:[%s2322_s1 + $0x320] sm:$0xff]  ;;  %v315_v11 = vld [vmem:[%s2322_s1 + $0x118] sm:$0xff]  ;;  %v420_v14 = vrot.slane %v344_v5, 1 }
  0x48   : > { %553 = vmatprep.subr.mxu1 %v333_v24  ;;  %478 = vmatprep.subr.mxu0 %v1440_v27  ;;  %v316_v7 = vld [vmem:[%s2322_s1 + $0x120] sm:$0xff]  ;;  %v1423_v12 = vld [vmem:[%s2322_s1 + $0x310] sm:$0xff]  ;;  %v1422_v16 = vld [vmem:[%s2322_s1 + $0x308] sm:$0xff]  ;;  %v425_v19 = vsel %vm419_vm2, %v423_v8, %v424_v9 }
  0x49   : > { %554 = vmatpush2.msra.mxu1 %v332_v26  ;;  %479 = vmatpush2.msra.mxu0 %v1439_v29  ;;  %v314_v13 = vld [vmem:[%s2322_s1 + $0x110] sm:$0xff]  ;;  %v313_v17 = vld [vmem:[%s2322_s1 + $0x108] sm:$0xff]  ;;  %v1421_v18 = vld [vmem:[%s2322_s1 + $0x300] sm:$0xff]  ;;  %v422_v22 = vsel %vm419_vm2, %v420_v14, %v421_v15 }
  0x4a   : > { %555 = vmatprep.subr.mxu1 %v331_v28  ;;  %480 = vmatprep.subr.mxu0 %v1438_v37  ;;  %v312_v20 = vld [vmem:[%s2322_s1 + $0x100] sm:$0xff]  ;;  %v277_v21 = vld [vmem:[#allocation2 + $0x8] sm:$0xff]  ;;  %v1484_v24 = vld [vmem:[%s2322_s1 + $0x4f8] sm:$0xff] }
  0x4b   : > { %556 = vmatpush2.msra.mxu1 %v330_v32  ;;  %481 = vmatpush2.msra.mxu0 %v1437_v41  ;;  %v276_v23 = vld [vmem:[#allocation2] sm:$0xff]  ;;  %v347_v25 = vld [vmem:[#allocation2 + $0x28] sm:$0x1]  ;;  %v1483_v26 = vld [vmem:[%s2322_s1 + $0x4f0] sm:$0xff] }
  0x4c   : > { %557 = vmatprep.subr.mxu1 %v329_v38  ;;  %482 = vmatprep.subr.mxu0 %v1436_v44  ;;  %v428_v27 = vrot.slane %v347_v25, 1  ;;  %v346_v28 = vld [vmem:[#allocation2 + $0x20] sm:$0x1]  ;;  %v1482_v29 = vld [vmem:[%s2322_s1 + $0x4e8] sm:$0xff]  ;;  %v1480_v35 = vld [vmem:[%s2322_s1 + $0x4d8] sm:$0xff] }
  0x4d   : > { %558 = vmatpush2.msra.mxu1 %v328_v42  ;;  %483 = vmatpush2.msra.mxu0 %v1435_v47  ;;  %v426_v30 = vrot.slane %v346_v28, 1  ;;  %v1481_v32 = vld [vmem:[%s2322_s1 + $0x4e0] sm:$0xff]  ;;  %v589_v34 = vld [vmem:[#allocation2 + $0x8] sm:$0xfc]  ;;  %v1479_v38 = vld [vmem:[%s2322_s1 + $0x4d0] sm:$0xff] }
  0x4e   : > { %559 = vmatprep.subr.mxu1 %v327_v45  ;;  %484 = vmatprep.subr.mxu0 %v1434_v49  ;;  %v429_v33 = vsel %vm419_vm2, %v424_v9, %v428_v27  ;;  %v665_v37 = vrot.slane %v589_v34, 2  ;;  %v1478_v39 = vld [vmem:[%s2322_s1 + $0x4c8] sm:$0xff]  ;;  %v1477_v41 = vld [vmem:[%s2322_s1 + $0x4c0] sm:$0xff]  ;;  %v1476_v42 = vld [vmem:[%s2322_s1 + $0x4b8] sm:$0xff] }
  0x4f   : > { %560 = vmatpush2.msra.mxu1 %v326_v48  ;;  %485 = vmatpush2.msra.mxu0 %v1433_v51  ;;  %v427_v36 = vsel %vm419_vm2, %v421_v15, %v426_v30  ;;  %v1475_v44 = vld [vmem:[%s2322_s1 + $0x4b0] sm:$0xff]  ;;  %v1474_v45 = vld [vmem:[%s2322_s1 + $0x4a8] sm:$0xff]  ;;  %v1473_v47 = vld [vmem:[%s2322_s1 + $0x4a0] sm:$0xff] }
  0x50   : > { %561 = vmatprep.subr.mxu1 %v325_v50  ;;  %486 = vmatprep.subr.mxu0 %v1432_v53  ;;  %v667_v40 = vsel %vm661_vm3, %v665_v37, %v666_v31  ;;  %v1472_v48 = vld [vmem:[%s2322_s1 + $0x498] sm:$0xff]  ;;  %v1471_v49 = vld [vmem:[%s2322_s1 + $0x490] sm:$0xff]  ;;  %v1470_v50 = vld [vmem:[%s2322_s1 + $0x488] sm:$0xff] }
  0x51   : > { %562 = vmatpush2.msra.mxu1 %v324_v52  ;;  %487 = vmatpush2.msra.mxu0 %v1431_v55  ;;  %v1469_v51 = vld [vmem:[%s2322_s1 + $0x480] sm:$0xff]  ;;  %v1468_v52 = vld [vmem:[%s2322_s1 + $0x478] sm:$0xff]  ;;  %v1467_v53 = vld [vmem:[%s2322_s1 + $0x470] sm:$0xff] }
  0x52   : > { %563 = vmatprep.subr.mxu1 %v323_v54  ;;  %488 = vmatprep.subr.mxu0 %v1430_v57  ;;  %v1466_v54 = vld [vmem:[%s2322_s1 + $0x468] sm:$0xff]  ;;  %v1465_v55 = vld [vmem:[%s2322_s1 + $0x460] sm:$0xff]  ;;  %v1463_v57 = vld [vmem:[%s2322_s1 + $0x450] sm:$0xff] }
  0x53   : > { %564 = vmatpush2.msra.mxu1 %v322_v56  ;;  %489 = vmatpush2.msra.mxu0 %v1429_v59  ;;  %v1464_v56 = vld [vmem:[%s2322_s1 + $0x458] sm:$0xff]  ;;  %v1461_v59 = vld [vmem:[%s2322_s1 + $0x440] sm:$0xff]  ;;  %v1507_v14 = vld [vmem:[%s2322_s1 + $0x5b0] sm:$0xff] }
  0x54   : > { %565 = vmatprep.subr.mxu1 %v321_v58  ;;  %490 = vmatprep.subr.mxu0 %v1428_v61  ;;  %v1462_v58 = vld [vmem:[%s2322_s1 + $0x448] sm:$0xff]  ;;  %v1459_v61 = vld [vmem:[%s2322_s1 + $0x430] sm:$0xff]  ;;  %v1457_v63 = vld [vmem:[%s2322_s1 + $0x420] sm:$0xff] }
  0x55   : > { %566 = vmatpush2.msra.mxu1 %v320_v60  ;;  %491 = vmatpush2.msra.mxu0 %v1427_v1  ;;  %v1460_v60 = vld [vmem:[%s2322_s1 + $0x438] sm:$0xff]  ;;  %v1513_v8 = vld [vmem:[%s2322_s1 + $0x5e0] sm:$0xff]  ;;  %v1506_v15 = vld [vmem:[%s2322_s1 + $0x5a8] sm:$0xff] }
  0x56   : > { %567 = vmatprep.subr.mxu1 %v319_v62  ;;  %492 = vmatprep.subr.mxu0 %v1426_v3  ;;  %v1458_v62 = vld [vmem:[%s2322_s1 + $0x428] sm:$0xff]  ;;  %v1456_v1 = vld [vmem:[%s2322_s1 + $0x418] sm:$0xff]  ;;  %v1493_v28 = vld [vmem:[%s2322_s1 + $0x540] sm:$0xff] }
  0x57   : > { %568 = vmatpush2.msra.mxu1 %v318_v2  ;;  %493 = vmatpush2.msra.mxu0 %v1425_v6  ;;  %v1455_v2 = vld [vmem:[%s2322_s1 + $0x410] sm:$0xff]  ;;  %v1454_v3 = vld [vmem:[%s2322_s1 + $0x408] sm:$0xff]  ;;  %v1516_v5 = vld [vmem:[%s2322_s1 + $0x5f8] sm:$0xff] }
  0x58   : > { %569 = vmatprep.subr.mxu1 %v317_v4  ;;  %494 = vmatprep.subr.mxu0 %v1424_v10  ;;  %v1453_v4 = vld [vmem:[%s2322_s1 + $0x400] sm:$0xff]  ;;  %v1515_v6 = vld [vmem:[%s2322_s1 + $0x5f0] sm:$0xff]  ;;  %v1512_v9 = vld [vmem:[%s2322_s1 + $0x5d8] sm:$0xff] }
  0x59   : > { %570 = vmatpush2.msra.mxu1 %v316_v7  ;;  %495 = vmatpush2.msra.mxu0 %v1423_v12  ;;  %v1514_v7 = vld [vmem:[%s2322_s1 + $0x5e8] sm:$0xff]  ;;  %v1511_v10 = vld [vmem:[%s2322_s1 + $0x5d0] sm:$0xff]  ;;  %v1509_v12 = vld [vmem:[%s2322_s1 + $0x5c0] sm:$0xff] }
  0x5a   : > { %571 = vmatprep.subr.mxu1 %v315_v11  ;;  %496 = vmatprep.subr.mxu0 %v1422_v16  ;;  %v1510_v11 = vld [vmem:[%s2322_s1 + $0x5c8] sm:$0xff]  ;;  %v1505_v16 = vld [vmem:[%s2322_s1 + $0x5a0] sm:$0xff]  ;;  %v1496_v25 = vld [vmem:[%s2322_s1 + $0x558] sm:$0xff] }
  0x5b   : > { %572 = vmatpush2.msra.mxu1 %v314_v13  ;;  %497 = vmatpush2.msra.mxu0 %v1421_v18  ;;  %v1508_v13 = vld [vmem:[%s2322_s1 + $0x5b8] sm:$0xff]  ;;  %v1503_v18 = vld [vmem:[%s2322_s1 + $0x590] sm:$0xff]  ;;  %v1494_v27 = vld [vmem:[%s2322_s1 + $0x548] sm:$0xff] }
  0x5c   : > { %573 = vmatprep.subr.mxu1 %v313_v17  ;;  %498 = vmatprep.mubr.f32.mxu0 %v425_v19  ;;  %v1504_v17 = vld [vmem:[%s2322_s1 + $0x598] sm:$0xff]  ;;  %v1502_v19 = vld [vmem:[%s2322_s1 + $0x588] sm:$0xff]  ;;  %v1491_v30 = vld [vmem:[%s2322_s1 + $0x530] sm:$0xff] }
  0x5d   : > { %574 = vmatpush2.msra.mxu1 %v312_v20  ;;  %575 = vmatprep.mubr.f32.mxu1 %v277_v21  ;;  %v1501_v20 = vld [vmem:[%s2322_s1 + $0x580] sm:$0xff]  ;;  %v1500_v21 = vld [vmem:[%s2322_s1 + $0x578] sm:$0xff]  ;;  %v591_v34 = vld [vmem:[#allocation2 + $0x28] sm:$0x3] }
  0x5e   : > { %499 = vmatmul.mubr.f32.vlgmr.msra.gmra.mxu0 %v422_v22  ;;  %576 = vmatmul.mubr.f32.vlgmr.msra.gmra.mxu1 %v276_v23  ;;  %v1499_v22 = vld [vmem:[%s2322_s1 + $0x570] sm:$0xff]  ;;  %v1498_v23 = vld [vmem:[%s2322_s1 + $0x568] sm:$0xff] }
  0x5f   : > { %676 = vmatprep.subr.mxu0 %v1484_v24  ;;  %581 = vmatprep.mubr.f32.mxu1 %v1955_v43  ;;  %v1497_v24 = vld [vmem:[%s2322_s1 + $0x560] sm:$0xff]  ;;  %v834_v43 = vld [vmem:[#allocation4 + $0xd0] sm:$0xff] }
  0x60   : > { %677 = vmatpush1.msra.mxu0 %v1483_v26  ;;  %504 = vmatprep.mubr.f32.mxu0 %v429_v33  ;;  %v1495_v26 = vld [vmem:[%s2322_s1 + $0x550] sm:$0xff]  ;;  %v1490_v33 = vld [vmem:[%s2322_s1 + $0x528] sm:$0xff] }
  0x61   : > { %678 = vmatprep.subr.mxu0 %v1482_v29  ;;  %v1492_v29 = vld [vmem:[%s2322_s1 + $0x538] sm:$0xff] }
  0x62   : > { %679 = vmatpush1.msra.mxu0 %v1481_v32  ;;  %582 = vmatmul.mubr.f32.gmra.mxu1 %v1964_v46  ;;  %v588_v32 = vld [vmem:[#allocation2] sm:$0xfc] }
  0x63   : > { %680 = vmatprep.subr.mxu0 %v1480_v35  ;;  %505 = vmatmul.mubr.f32.gmra.mxu0 %v427_v36  ;;  %v1489_v35 = vld [vmem:[%s2322_s1 + $0x520] sm:$0xff]  ;;  %v1488_v36 = vld [vmem:[%s2322_s1 + $0x518] sm:$0xff]  ;;  %v662_v37 = vrot.slane %v588_v32, 2 }
  0x64   : > { %681 = vmatpush1.msra.mxu0 %v1479_v38  ;;  %740 = vmatprep.mubr.f32.mxu0 %v667_v40  ;;  %v663_v38 = vrot.slane %v1964_v46, 2  ;;  %v670_v40 = vrot.slane %v591_v34, 2  ;;  %v815_v32 = vld [vmem:[#allocation4 + $0x38] sm:$0xff]  ;;  %v814_v34 = vld [vmem:[#allocation4 + $0x30] sm:$0xff] }
  0x65   : > { %682 = vmatprep.subr.mxu0 %v1478_v39  ;;  %v1487_v39 = vld [vmem:[%s2322_s1 + $0x510] sm:$0xff] }
  0x66   : > { %683 = vmatpush1.msra.mxu0 %v1477_v41  ;;  %v590_v41 = vld [vmem:[#allocation2 + $0x20] sm:$0x3]  ;;  %v664_v46 = vsel %vm661_vm3, %v662_v37, %v663_v38  ;;  %v883_v37 = vld [vmem:[#allocation4 + $0x230] sm:$0xff] }
  0x67   : > { %684 = vmatprep.subr.mxu0 %v1476_v42  ;;  %v1486_v42 = vld [vmem:[%s2322_s1 + $0x508] sm:$0xff] }
  0x68   : > { %685 = vmatpush1.msra.mxu0 %v1475_v44  ;;  %v1485_v44 = vld [vmem:[%s2322_s1 + $0x500] sm:$0xff] }
  0x69   : > { %686 = vmatprep.subr.mxu0 %v1474_v45  ;;  %v668_v45 = vrot.slane %v590_v41, 2  ;;  %v881_v41 = vld [vmem:[#allocation4 + $0x220] sm:$0xff] }
  0x6a   : > { %687 = vmatpush1.msra.mxu0 %v1473_v47  ;;  %v671_v47 = vsel %vm661_vm3, %v666_v31, %v670_v40  ;;  %v905_v31 = vld [vmem:[#allocation4 + $0x2e0] sm:$0xff]  ;;  %v811_v40 = vld [vmem:[#allocation4 + $0x18] sm:$0xff] }
  0x6b   : > { %688 = vmatprep.subr.mxu0 %v1472_v48  ;;  %v669_v48 = vsel %vm661_vm3, %v663_v38, %v668_v45  ;;  %v812_v38 = vld [vmem:[#allocation4 + $0x20] sm:$0xff]  ;;  %v879_v45 = vld [vmem:[#allocation4 + $0x210] sm:$0xff] }
  0x6c   : > { %689 = vmatpush1.msra.mxu0 %v1471_v49  ;;  %v839_v49 = vld [vmem:[#allocation4 + $0xf8] sm:$0xff] }
  0x6d   : > { %690 = vmatprep.subr.mxu0 %v1470_v50  ;;  %v838_v50 = vld [vmem:[#allocation4 + $0xf0] sm:$0xff] }
  0x6e   : > { %691 = vmatpush1.msra.mxu0 %v1469_v51  ;;  %v837_v51 = vld [vmem:[#allocation4 + $0xe8] sm:$0xff] }
  0x6f   : > { %692 = vmatprep.subr.mxu0 %v1468_v52  ;;  %v836_v52 = vld [vmem:[#allocation4 + $0xe0] sm:$0xff] }
  0x70   : > { %693 = vmatpush1.msra.mxu0 %v1467_v53  ;;  %v908_v53 = vld [vmem:[#allocation4 + $0x2f8] sm:$0xff] }
  0x71   : > { %694 = vmatprep.subr.mxu0 %v1466_v54  ;;  %v835_v54 = vld [vmem:[#allocation4 + $0xd8] sm:$0xff]  ;;  %961 = vmatprep.subr.mxu1 %v908_v53  ;;  %v869_v53 = vld [vmem:[#allocation4 + $0x1e8] sm:$0xff] }
  0x72   : > { %695 = vmatpush1.msra.mxu0 %v1465_v55  ;;  %v907_v55 = vld [vmem:[#allocation4 + $0x2f0] sm:$0xff] }
  0x73   : > { %696 = vmatprep.subr.mxu0 %v1464_v56  ;;  %v906_v56 = vld [vmem:[#allocation4 + $0x2e8] sm:$0xff]  ;;  %962 = vmatpush1.msra.mxu1 %v907_v55  ;;  %v868_v55 = vld [vmem:[#allocation4 + $0x1e0] sm:$0xff] }
  0x74   : > { %697 = vmatpush1.msra.mxu0 %v1463_v57  ;;  %v833_v57 = vld [vmem:[#allocation4 + $0xc8] sm:$0xff]  ;;  %963 = vmatprep.subr.mxu1 %v906_v56 }
  0x75   : > { %698 = vmatprep.subr.mxu0 %v1462_v58  ;;  %v904_v58 = vld [vmem:[#allocation4 + $0x2d8] sm:$0xff]  ;;  %964 = vmatpush1.msra.mxu1 %v905_v31  ;;  %v938_v56 = vld [vmem:[#allocation4 + $0x3e8] sm:$0xff]  ;;  %v937_v31 = vld [vmem:[#allocation4 + $0x3e0] sm:$0xff] }
  0x76   : > { %699 = vmatpush1.msra.mxu0 %v1461_v59  ;;  %v903_v59 = vld [vmem:[#allocation4 + $0x2d0] sm:$0xff]  ;;  %965 = vmatprep.subr.mxu1 %v904_v58  ;;  %v936_v58 = vld [vmem:[#allocation4 + $0x3d8] sm:$0xff] }
  0x77   : > { %700 = vmatprep.subr.mxu0 %v1460_v60  ;;  %v832_v60 = vld [vmem:[#allocation4 + $0xc0] sm:$0xff]  ;;  %966 = vmatpush1.msra.mxu1 %v903_v59  ;;  %v865_v59 = vld [vmem:[#allocation4 + $0x1c8] sm:$0xff] }
  0x78   : > { %701 = vmatpush1.msra.mxu0 %v1459_v61  ;;  %v902_v61 = vld [vmem:[#allocation4 + $0x2c8] sm:$0xff] }
  0x79   : > { %702 = vmatprep.subr.mxu0 %v1458_v62  ;;  %v831_v62 = vld [vmem:[#allocation4 + $0xb8] sm:$0xff]  ;;  %967 = vmatprep.subr.mxu1 %v902_v61 }
  0x7a   : > { %703 = vmatpush1.msra.mxu0 %v1457_v63  ;;  %v901_v63 = vld [vmem:[#allocation4 + $0x2c0] sm:$0xff]  ;;  %v863_v61 = vld [vmem:[#allocation4 + $0x1b8] sm:$0xff] }
  0x7b   : > { %704 = vmatprep.subr.mxu0 %v1456_v1  ;;  %v830_v1 = vld [vmem:[#allocation4 + $0xb0] sm:$0xff]  ;;  %968 = vmatpush1.msra.mxu1 %v901_v63  ;;  %v861_v63 = vld [vmem:[#allocation4 + $0x1a8] sm:$0xff] }
  0x7c   : > { %705 = vmatpush1.msra.mxu0 %v1455_v2  ;;  %v900_v2 = vld [vmem:[#allocation4 + $0x2b8] sm:$0xff] }
  0x7d   : > { %706 = vmatprep.subr.mxu0 %v1454_v3  ;;  %v829_v3 = vld [vmem:[#allocation4 + $0xa8] sm:$0xff]  ;;  %969 = vmatprep.subr.mxu1 %v900_v2  ;;  %v935_v2 = vld [vmem:[#allocation4 + $0x3d0] sm:$0xff] }
  0x7e   : > { %707 = vmatpush1.msra.mxu0 %v1453_v4  ;;  %v899_v4 = vld [vmem:[#allocation4 + $0x2b0] sm:$0xff] }
  0x7f   : > { %708 = vmatprep.subr.mxu0 %v1516_v5  ;;  %v828_v5 = vld [vmem:[#allocation4 + $0xa0] sm:$0xff]  ;;  %970 = vmatpush1.msra.mxu1 %v899_v4 }
  0x80   : > { %709 = vmatpush2.msra.mxu0 %v1515_v6  ;;  %v898_v6 = vld [vmem:[#allocation4 + $0x2a8] sm:$0xff]  ;;  %v933_v4 = vld [vmem:[#allocation4 + $0x3c0] sm:$0xff] }
  0x81   : > { %710 = vmatprep.subr.mxu0 %v1514_v7  ;;  %v827_v7 = vld [vmem:[#allocation4 + $0x98] sm:$0xff]  ;;  %971 = vmatprep.subr.mxu1 %v898_v6  ;;  %v931_v6 = vld [vmem:[#allocation4 + $0x3b0] sm:$0xff] }
  0x82   : > { %711 = vmatpush2.msra.mxu0 %v1513_v8  ;;  %v897_v8 = vld [vmem:[#allocation4 + $0x2a0] sm:$0xff] }
  0x83   : > { %712 = vmatprep.subr.mxu0 %v1512_v9  ;;  %v826_v9 = vld [vmem:[#allocation4 + $0x90] sm:$0xff]  ;;  %972 = vmatpush1.msra.mxu1 %v897_v8  ;;  %v930_v8 = vld [vmem:[#allocation4 + $0x3a8] sm:$0xff] }
  0x84   : > { %713 = vmatpush2.msra.mxu0 %v1511_v10  ;;  %v896_v10 = vld [vmem:[#allocation4 + $0x298] sm:$0xff] }
  0x85   : > { %714 = vmatprep.subr.mxu0 %v1510_v11  ;;  %v825_v11 = vld [vmem:[#allocation4 + $0x88] sm:$0xff]  ;;  %973 = vmatprep.subr.mxu1 %v896_v10  ;;  %v929_v10 = vld [vmem:[#allocation4 + $0x3a0] sm:$0xff] }
  0x86   : > { %715 = vmatpush2.msra.mxu0 %v1509_v12  ;;  %v895_v12 = vld [vmem:[#allocation4 + $0x290] sm:$0xff] }
  0x87   : > { %716 = vmatprep.subr.mxu0 %v1508_v13  ;;  %v824_v13 = vld [vmem:[#allocation4 + $0x80] sm:$0xff]  ;;  %974 = vmatpush1.msra.mxu1 %v895_v12  ;;  %v928_v12 = vld [vmem:[#allocation4 + $0x398] sm:$0xff] }
  0x88   : > { %717 = vmatpush2.msra.mxu0 %v1507_v14  ;;  %v894_v14 = vld [vmem:[#allocation4 + $0x288] sm:$0xff] }
  0x89   : > { %718 = vmatprep.subr.mxu0 %v1506_v15  ;;  %v823_v15 = vld [vmem:[#allocation4 + $0x78] sm:$0xff]  ;;  %975 = vmatprep.subr.mxu1 %v894_v14  ;;  %v927_v14 = vld [vmem:[#allocation4 + $0x390] sm:$0xff] }
  0x8a   : > { %719 = vmatpush2.msra.mxu0 %v1505_v16  ;;  %v893_v16 = vld [vmem:[#allocation4 + $0x280] sm:$0xff] }
  0x8b   : > { %720 = vmatprep.subr.mxu0 %v1504_v17  ;;  %v822_v17 = vld [vmem:[#allocation4 + $0x70] sm:$0xff]  ;;  %976 = vmatpush1.msra.mxu1 %v893_v16  ;;  %v926_v16 = vld [vmem:[#allocation4 + $0x388] sm:$0xff] }
  0x8c   : > { %721 = vmatpush2.msra.mxu0 %v1503_v18  ;;  %v892_v18 = vld [vmem:[#allocation4 + $0x278] sm:$0xff] }
  0x8d   : > { %722 = vmatprep.subr.mxu0 %v1502_v19  ;;  %v821_v19 = vld [vmem:[#allocation4 + $0x68] sm:$0xff]  ;;  %977 = vmatprep.subr.mxu1 %v892_v18  ;;  %v925_v18 = vld [vmem:[#allocation4 + $0x380] sm:$0xff] }
  0x8e   : > { %723 = vmatpush2.msra.mxu0 %v1501_v20  ;;  %v891_v20 = vld [vmem:[#allocation4 + $0x270] sm:$0xff] }
  0x8f   : > { %724 = vmatprep.subr.mxu0 %v1500_v21  ;;  %v820_v21 = vld [vmem:[#allocation4 + $0x60] sm:$0xff]  ;;  %978 = vmatpush1.msra.mxu1 %v891_v20  ;;  %v924_v20 = vld [vmem:[#allocation4 + $0x378] sm:$0xff] }
  0x90   : > { %725 = vmatpush2.msra.mxu0 %v1499_v22  ;;  %v890_v22 = vld [vmem:[#allocation4 + $0x268] sm:$0xff] }
  0x91   : > { %726 = vmatprep.subr.mxu0 %v1498_v23  ;;  %v819_v23 = vld [vmem:[#allocation4 + $0x58] sm:$0xff]  ;;  %979 = vmatprep.subr.mxu1 %v890_v22  ;;  %v923_v22 = vld [vmem:[#allocation4 + $0x370] sm:$0xff] }
  0x92   : > { %727 = vmatpush2.msra.mxu0 %v1497_v24  ;;  %v889_v24 = vld [vmem:[#allocation4 + $0x260] sm:$0xff] }
  0x93   : > { %728 = vmatprep.subr.mxu0 %v1496_v25  ;;  %v818_v25 = vld [vmem:[#allocation4 + $0x50] sm:$0xff]  ;;  %980 = vmatpush1.msra.mxu1 %v889_v24  ;;  %v922_v24 = vld [vmem:[#allocation4 + $0x368] sm:$0xff] }
  0x94   : > { %729 = vmatpush2.msra.mxu0 %v1495_v26  ;;  %v888_v26 = vld [vmem:[#allocation4 + $0x258] sm:$0xff] }
  0x95   : > { %730 = vmatprep.subr.mxu0 %v1494_v27  ;;  %v817_v27 = vld [vmem:[#allocation4 + $0x48] sm:$0xff]  ;;  %981 = vmatprep.subr.mxu1 %v888_v26  ;;  %v921_v26 = vld [vmem:[#allocation4 + $0x360] sm:$0xff] }
  0x96   : > { %731 = vmatpush2.msra.mxu0 %v1493_v28  ;;  %v887_v28 = vld [vmem:[#allocation4 + $0x250] sm:$0xff] }
  0x97   : > { %732 = vmatprep.subr.mxu0 %v1492_v29  ;;  %v816_v29 = vld [vmem:[#allocation4 + $0x40] sm:$0xff]  ;;  %982 = vmatpush1.msra.mxu1 %v887_v28  ;;  %v920_v28 = vld [vmem:[#allocation4 + $0x358] sm:$0xff] }
  0x98   : > { %733 = vmatpush2.msra.mxu0 %v1491_v30  ;;  %v886_v30 = vld [vmem:[#allocation4 + $0x248] sm:$0xff] }
  0x99   : > { %734 = vmatprep.subr.mxu0 %v1490_v33  ;;  %v885_v33 = vld [vmem:[#allocation4 + $0x240] sm:$0xff]  ;;  %983 = vmatprep.subr.mxu1 %v886_v30  ;;  %v919_v30 = vld [vmem:[#allocation4 + $0x350] sm:$0xff] }
  0x9a   : > { %735 = vmatpush2.msra.mxu0 %v1489_v35  ;;  %v884_v35 = vld [vmem:[#allocation4 + $0x238] sm:$0xff]  ;;  %984 = vmatpush1.msra.mxu1 %v885_v33  ;;  %v918_v33 = vld [vmem:[#allocation4 + $0x348] sm:$0xff] }
  0x9b   : > { %736 = vmatprep.subr.mxu0 %v1488_v36  ;;  %v813_v36 = vld [vmem:[#allocation4 + $0x28] sm:$0xff]  ;;  %985 = vmatprep.subr.mxu1 %v884_v35  ;;  %v917_v35 = vld [vmem:[#allocation4 + $0x340] sm:$0xff] }
  0x9c   : > { %737 = vmatpush2.msra.mxu0 %v1487_v39  ;;  %v882_v39 = vld [vmem:[#allocation4 + $0x228] sm:$0xff]  ;;  %986 = vmatpush1.msra.mxu1 %v883_v37  ;;  %v916_v37 = vld [vmem:[#allocation4 + $0x338] sm:$0xff] }
  0x9d   : > { %738 = vmatprep.subr.mxu0 %v1486_v42  ;;  %v810_v42 = vld [vmem:[#allocation4 + $0x10] sm:$0xff]  ;;  %987 = vmatprep.subr.mxu1 %v882_v39 }
  0x9e   : > { %739 = vmatpush2.msra.mxu0 %v1485_v44  ;;  %v880_v44 = vld [vmem:[#allocation4 + $0x218] sm:$0xff]  ;;  %988 = vmatpush1.msra.mxu1 %v881_v41  ;;  %v915_v39 = vld [vmem:[#allocation4 + $0x330] sm:$0xff]  ;;  %v914_v41 = vld [vmem:[#allocation4 + $0x328] sm:$0xff] }
  0x9f   : > { %741 = vmatmul.mubr.f32.vlgmr.msra.gmra.mxu0 %v664_v46  ;;  %1038 = vmatprep.subr.mxu0 %v839_v49  ;;  %v809_v46 = vld [vmem:[#allocation4 + $0x8] sm:$0xff]  ;;  %v871_v49 = vld [vmem:[#allocation4 + $0x1f8] sm:$0xff] }
  0xa0   : > { %746 = vmatprep.mubr.f32.mxu0 %v671_v47  ;;  %1039 = vmatpush1.msra.mxu0 %v838_v50  ;;  %v808_v47 = vld [vmem:[#allocation4] sm:$0xff] }
  0xa1   : > { %1040 = vmatprep.subr.mxu0 %v837_v51  ;;  %989 = vmatprep.subr.mxu1 %v880_v44  ;;  %v877_v50 = vld [vmem:[#allocation4 + $0x200] sm:$0xff]  ;;  %v870_v51 = vld [vmem:[#allocation4 + $0x1f0] sm:$0xff]  ;;  %v841_v44 = vld [vmem:[#allocation4 + $0x108] sm:$0xff] }
  0xa2   : > { %1041 = vmatpush1.msra.mxu0 %v836_v52  ;;  %990 = vmatpush1.msra.mxu1 %v879_v45  ;;  %v940_v52 = vld [vmem:[#allocation4 + $0x3f8] sm:$0xff]  ;;  %v913_v45 = vld [vmem:[#allocation4 + $0x320] sm:$0xff] }
  0xa3   : > { %747 = vmatmul.mubr.f32.gmra.mxu0 %v669_v48  ;;  %1042 = vmatprep.subr.mxu0 %v835_v54  ;;  %v878_v48 = vld [vmem:[#allocation4 + $0x208] sm:$0xff]  ;;  %v939_v54 = vld [vmem:[#allocation4 + $0x3f0] sm:$0xff] }
  0xa4   : > { %1043 = vmatpush1.msra.mxu0 %v834_v43  ;;  %991 = vmatprep.subr.mxu1 %v878_v48  ;;  %v867_v43 = vld [vmem:[#allocation4 + $0x1d8] sm:$0xff]  ;;  %v911_v48 = vld [vmem:[#allocation4 + $0x310] sm:$0xff] }
  0xa5   : > { %1044 = vmatprep.subr.mxu0 %v833_v57  ;;  %992 = vmatpush1.msra.mxu1 %v877_v50  ;;  %v866_v57 = vld [vmem:[#allocation4 + $0x1d0] sm:$0xff]  ;;  %v909_v50 = vld [vmem:[#allocation4 + $0x300] sm:$0xff] }
  0xa6   : > { %1045 = vmatpush1.msra.mxu0 %v832_v60  ;;  %993 = vmatprep.subr.mxu1 %v940_v52  ;;  %v864_v60 = vld [vmem:[#allocation4 + $0x1c0] sm:$0xff] }
  0xa7   : > { %1046 = vmatprep.subr.mxu0 %v831_v62  ;;  %994 = vmatpush2.msra.mxu1 %v939_v54  ;;  %v862_v62 = vld [vmem:[#allocation4 + $0x1b0] sm:$0xff] }
  0xa8   : > { %1047 = vmatpush1.msra.mxu0 %v830_v1  ;;  %995 = vmatprep.subr.mxu1 %v938_v56  ;;  %v860_v1 = vld [vmem:[#allocation4 + $0x1a0] sm:$0xff] }
  0xa9   : > { %1048 = vmatprep.subr.mxu0 %v829_v3  ;;  %996 = vmatpush2.msra.mxu1 %v937_v31  ;;  %v934_v3 = vld [vmem:[#allocation4 + $0x3c8] sm:$0xff] }
  0xaa   : > { %1049 = vmatpush1.msra.mxu0 %v828_v5  ;;  %997 = vmatprep.subr.mxu1 %v936_v58  ;;  %v932_v5 = vld [vmem:[#allocation4 + $0x3b8] sm:$0xff] }
  0xab   : > { %1050 = vmatprep.subr.mxu0 %v827_v7  ;;  %998 = vmatpush2.msra.mxu1 %v935_v2  ;;  %v859_v7 = vld [vmem:[#allocation4 + $0x198] sm:$0xff] }
  0xac   : > { %1051 = vmatpush1.msra.mxu0 %v826_v9  ;;  %999 = vmatprep.subr.mxu1 %v934_v3  ;;  %v858_v9 = vld [vmem:[#allocation4 + $0x190] sm:$0xff] }
  0xad   : > { %1052 = vmatprep.subr.mxu0 %v825_v11  ;;  %1000 = vmatpush2.msra.mxu1 %v933_v4  ;;  %v857_v11 = vld [vmem:[#allocation4 + $0x188] sm:$0xff] }
  0xae   : > { %1053 = vmatpush1.msra.mxu0 %v824_v13  ;;  %1001 = vmatprep.subr.mxu1 %v932_v5  ;;  %v856_v13 = vld [vmem:[#allocation4 + $0x180] sm:$0xff] }
  0xaf   : > { %1054 = vmatprep.subr.mxu0 %v823_v15  ;;  %1002 = vmatpush2.msra.mxu1 %v931_v6  ;;  %v855_v15 = vld [vmem:[#allocation4 + $0x178] sm:$0xff] }
  0xb0   : > { %1055 = vmatpush1.msra.mxu0 %v822_v17  ;;  %1003 = vmatprep.subr.mxu1 %v930_v8  ;;  %v854_v17 = vld [vmem:[#allocation4 + $0x170] sm:$0xff] }
  0xb1   : > { %1056 = vmatprep.subr.mxu0 %v821_v19  ;;  %1004 = vmatpush2.msra.mxu1 %v929_v10  ;;  %v853_v19 = vld [vmem:[#allocation4 + $0x168] sm:$0xff] }
  0xb2   : > { %1057 = vmatpush1.msra.mxu0 %v820_v21  ;;  %1005 = vmatprep.subr.mxu1 %v928_v12  ;;  %v852_v21 = vld [vmem:[#allocation4 + $0x160] sm:$0xff] }
  0xb3   : > { %1058 = vmatprep.subr.mxu0 %v819_v23  ;;  %1006 = vmatpush2.msra.mxu1 %v927_v14  ;;  %v851_v23 = vld [vmem:[#allocation4 + $0x158] sm:$0xff] }
  0xb4   : > { %1059 = vmatpush1.msra.mxu0 %v818_v25  ;;  %1007 = vmatprep.subr.mxu1 %v926_v16  ;;  %v850_v25 = vld [vmem:[#allocation4 + $0x150] sm:$0xff] }
  0xb5   : > { %1060 = vmatprep.subr.mxu0 %v817_v27  ;;  %1008 = vmatpush2.msra.mxu1 %v925_v18  ;;  %v849_v27 = vld [vmem:[#allocation4 + $0x148] sm:$0xff] }
  0xb6   : > { %1061 = vmatpush1.msra.mxu0 %v816_v29  ;;  %1009 = vmatprep.subr.mxu1 %v924_v20  ;;  %v848_v29 = vld [vmem:[#allocation4 + $0x140] sm:$0xff] }
  0xb7   : > { %1062 = vmatprep.subr.mxu0 %v815_v32  ;;  %1010 = vmatpush2.msra.mxu1 %v923_v22  ;;  %v847_v32 = vld [vmem:[#allocation4 + $0x138] sm:$0xff] }
  0xb8   : > { %1063 = vmatpush1.msra.mxu0 %v814_v34  ;;  %1011 = vmatprep.subr.mxu1 %v922_v24  ;;  %v846_v34 = vld [vmem:[#allocation4 + $0x130] sm:$0xff] }
  0xb9   : > { %1064 = vmatprep.subr.mxu0 %v813_v36  ;;  %1012 = vmatpush2.msra.mxu1 %v921_v26  ;;  %v845_v36 = vld [vmem:[#allocation4 + $0x128] sm:$0xff] }
  0xba   : > { %1065 = vmatpush1.msra.mxu0 %v812_v38  ;;  %1013 = vmatprep.subr.mxu1 %v920_v28  ;;  %v844_v38 = vld [vmem:[#allocation4 + $0x120] sm:$0xff] }
  0xbb   : > { %1066 = vmatprep.subr.mxu0 %v811_v40  ;;  %1014 = vmatpush2.msra.mxu1 %v919_v30  ;;  %v843_v40 = vld [vmem:[#allocation4 + $0x118] sm:$0xff] }
  0xbc   : > { %1067 = vmatpush1.msra.mxu0 %v810_v42  ;;  %1015 = vmatprep.subr.mxu1 %v918_v33  ;;  %v842_v42 = vld [vmem:[#allocation4 + $0x110] sm:$0xff] }
  0xbd   : > { %1068 = vmatprep.subr.mxu0 %v809_v46  ;;  %1016 = vmatpush2.msra.mxu1 %v917_v35  ;;  %v840_v46 = vld [vmem:[#allocation4 + $0x100] sm:$0xff] }
  0xbe   : > { %1069 = vmatpush1.msra.mxu0 %v808_v47  ;;  %1017 = vmatprep.subr.mxu1 %v916_v37  ;;  %v912_v47 = vld [vmem:[#allocation4 + $0x318] sm:$0xff] }
  0xbf   : > { %1070 = vmatprep.subr.mxu0 %v871_v49  ;;  %1018 = vmatpush2.msra.mxu1 %v915_v39  ;;  %v910_v49 = vld [vmem:[#allocation4 + $0x308] sm:$0xff] }
  0xc0   : > { %1071 = vmatpush2.msra.mxu0 %v870_v51  ;;  %1019 = vmatprep.subr.mxu1 %v914_v41  ;;  %v1151_v51 = vld [vmem:[#allocation4 + $0x4f8] sm:$0xff]  ;;  %v1149_v41 = vld [vmem:[#allocation4 + $0x4e8] sm:$0xff] }
  0xc1   : > { %1072 = vmatprep.subr.mxu0 %v869_v53  ;;  %1020 = vmatpush2.msra.mxu1 %v913_v45  ;;  %v2267_v53 = vshrl.u32 %v244_v0, 7 }
  0xc2   : > { %1073 = vmatpush2.msra.mxu0 %v868_v55  ;;  %1021 = vmatprep.subr.mxu1 %v912_v47  ;;  %v1147_v47 = vld [vmem:[#allocation4 + $0x4d8] sm:$0xff] }
  0xc3   : > { %1074 = vmatprep.subr.mxu0 %v867_v43  ;;  %1022 = vmatpush2.msra.mxu1 %v911_v48  ;;  %v761_v43 = vsub.s32 0, %v2267_v53  ;;  %v765_v58 = vsub.s32 1, %v2267_v53 }
  0xc4   : > { %1075 = vmatpush2.msra.mxu0 %v866_v57  ;;  %1023 = vmatprep.subr.mxu1 %v910_v49  ;;  %v757_v57 = vld [vmem:[%s2323_s2] sm:$0x3] }
  0xc5   : > { %1076 = vmatprep.subr.mxu0 %v865_v59  ;;  %1024 = vmatpush2.msra.mxu1 %v909_v50  ;;  %v766_v2 = vrot.slane %v757_v57, %v765_v58  ;;  %v1146_v50 = vld [vmem:[#allocation4 + $0x4d0] sm:$0xff] }
  0xc6   : > { %1077 = vmatpush2.msra.mxu0 %v864_v60  ;;  %1202 = vmatprep.subr.mxu1 %v1151_v51 }
  0xc7   : > { %1078 = vmatprep.subr.mxu0 %v863_v61 }
  0xc8   : > { %1079 = vmatpush2.msra.mxu0 %v862_v62  ;;  %v762_v62 = vrot.slane %v757_v57, %v761_v43  ;;  %v1141_v57 = vld [vmem:[#allocation4 + $0x4a8] sm:$0xff] }
  0xc9   : > { %1080 = vmatprep.subr.mxu0 %v861_v63 }
  0xca   : > { %1081 = vmatpush2.msra.mxu0 %v860_v1 }
  0xcb   : > { %1082 = vmatprep.subr.mxu0 %v859_v7 }
  0xcc   : > { %1083 = vmatpush2.msra.mxu0 %v858_v9 }
  0xcd   : > { %1084 = vmatprep.subr.mxu0 %v857_v11 }
  0xce   : > { %1085 = vmatpush2.msra.mxu0 %v856_v13 }
  0xcf   : > { %1086 = vmatprep.subr.mxu0 %v855_v15 }
  0xd0   : > { %1087 = vmatpush2.msra.mxu0 %v854_v17 }
  0xd1   : > { %1088 = vmatprep.subr.mxu0 %v853_v19 }
  0xd2   : > { %1089 = vmatpush2.msra.mxu0 %v852_v21 }
  0xd3   : > { %1090 = vmatprep.subr.mxu0 %v851_v23 }
  0xd4   : > { %1091 = vmatpush2.msra.mxu0 %v850_v25 }
  0xd5   : > { %1092 = vmatprep.subr.mxu0 %v849_v27 }
  0xd6   : > { %1093 = vmatpush2.msra.mxu0 %v848_v29 }
  0xd7   : > { %1094 = vmatprep.subr.mxu0 %v847_v32 }
  0xd8   : > { %1095 = vmatpush2.msra.mxu0 %v846_v34 }
  0xd9   : > { %1096 = vmatprep.subr.mxu0 %v845_v36 }
  0xda   : > { %1097 = vmatpush2.msra.mxu0 %v844_v38  ;;  %v1150_v38 = vld [vmem:[#allocation4 + $0x4f0] sm:$0xff] }
  0xdb   : > { %1098 = vmatprep.subr.mxu0 %v843_v40 }
  0xdc   : > { %1099 = vmatpush2.msra.mxu0 %v842_v42 }
  0xdd   : > { %1100 = vmatprep.subr.mxu0 %v841_v44 }
  0xde   : > { %1101 = vmatpush2.msra.mxu0 %v840_v46  ;;  %v1148_v46 = vld [vmem:[#allocation4 + $0x4e0] sm:$0xff] }
 0x11e   : > { %v500_v52 = vpop.f32.mrf.mxu0  ;;  %v577_v54 = vpop.f32.mrf.mxu1 }
 0x11f   : > { %v578_v61 = vadd.f32 %v577_v54, %v500_v52  ;;  %v1145_v52 = vld [vmem:[#allocation4 + $0x4c8] sm:$0xff] }
 0x120   : > { %v502_v55 = vpop.f32.mrf.mxu0  ;;  %v579_v31 = vpop.f32.mrf.mxu1 }
 0x121   : > { %v580_v63 = vadd.f32 %v579_v31, %v502_v55  ;;  %v1144_v55 = vld [vmem:[#allocation4 + $0x4c0] sm:$0xff]  ;;  %v1142_v31 = vld [vmem:[#allocation4 + $0x4b0] sm:$0xff] }
 0x122   : > { %v583_v59 = vpop.f32.mrf.mxu1 }
 0x123   : > { %v506_v56 = vpop.f32.mrf.mxu0 }
 0x124   : > { %v585_v3 = vpop.f32.mrf.mxu1  ;;  %v584_v5 = vadd.f32 %v583_v59, %v506_v56  ;;  %v1143_v56 = vld [vmem:[#allocation4 + $0x4b8] sm:$0xff]  ;;  %v1140_v59 = vld [vmem:[#allocation4 + $0x4a0] sm:$0xff] }
 0x125   : > { %v508_v60 = vpop.f32.mrf.mxu0 }
 0x126   : > { %v586_v9 = vadd.f32 %v585_v3, %v508_v60  ;;  %v1139_v60 = vld [vmem:[#allocation4 + $0x498] sm:$0xff]  ;;  %v1132_v3 = vld [vmem:[#allocation4 + $0x460] sm:$0xff] }
 0x15f   : > { %v742_v0 = vpop.f32.mrf.mxu0 }
 0x160   : > { %v753_v1 = vadd.f32 %v742_v0, %v578_v61  ;;  %v1138_v61 = vld [vmem:[#allocation4 + $0x490] sm:$0xff]  ;;  %v1136_v0 = vld [vmem:[#allocation4 + $0x480] sm:$0xff] }
 0x161   : > { %v744_v4 = vpop.f32.mrf.mxu0 }
 0x162   : > { %v769_v6 = vadd.f32 %v762_v62, %v753_v1  ;;  %v754_v7 = vadd.f32 %v744_v4, %v580_v63  ;;  %v1135_v63 = vld [vmem:[#allocation4 + $0x478] sm:$0xff]  ;;  %v1134_v1 = vld [vmem:[#allocation4 + $0x470] sm:$0xff] }
 0x163   : > { %v748_v8 = vpop.f32.mrf.mxu0  ;;  %v1131_v4 = vld [vmem:[#allocation4 + $0x458] sm:$0xff] }
 0x164   : > { %v773_v10 = vmax.f32 %v769_v6, 0.0  ;;  %v770_v11 = vadd.f32 %v766_v2, %v754_v7  ;;  %v755_v12 = vadd.f32 %v748_v8, %v584_v5  ;;  %v1130_v5 = vld [vmem:[#allocation4 + $0x450] sm:$0xff]  ;;  %v1129_v6 = vld [vmem:[#allocation4 + $0x448] sm:$0xff]  ;;  %v1128_v7 = vld [vmem:[#allocation4 + $0x440] sm:$0xff] }
 0x165   : > { %v750_v13 = vpop.f32.mrf.mxu0  ;;  %v1127_v8 = vld [vmem:[#allocation4 + $0x438] sm:$0xff] }
 0x166   : > { %v786_v14 = vrot.slane %v773_v10, 7  ;;  %v774_v15 = vmax.f32 %v770_v11, 0.0  ;;  %v771_v16 = vadd.f32 %v762_v62, %v755_v12  ;;  %v756_v17 = vadd.f32 %v750_v13, %v586_v9  ;;  %v1137_v62 = vld [vmem:[#allocation4 + $0x488] sm:$0xff]  ;;  %v1126_v9 = vld [vmem:[#allocation4 + $0x430] sm:$0xff]  ;;  %v1124_v11 = vld [vmem:[#allocation4 + $0x420] sm:$0xff] }
 0x167   : > { %v1125_v10 = vld [vmem:[#allocation4 + $0x428] sm:$0xff]  ;;  %v1123_v12 = vld [vmem:[#allocation4 + $0x418] sm:$0xff]  ;;  %v1122_v13 = vld [vmem:[#allocation4 + $0x410] sm:$0xff] }
 0x168   : > { %798 = vst [vmem:[#allocation3] sm:$0xfe] %v786_v14  ;;  %v787_v18 = vrot.slane %v774_v15, 7  ;;  %v775_v19 = vmax.f32 %v771_v16, 0.0  ;;  %v772_v20 = vadd.f32 %v766_v2, %v756_v17  ;;  %v1133_v2 = vld [vmem:[#allocation4 + $0x468] sm:$0xff]  ;;  %v1120_v15 = vld [vmem:[#allocation4 + $0x400] sm:$0xff] }
 0x169   : > { %v1183_v16 = vld [vmem:[#allocation4 + $0x5f8] sm:$0xff]  ;;  %v1182_v17 = vld [vmem:[#allocation4 + $0x5f0] sm:$0xff] }
 0x16a   : > { %799 = vst [vmem:[#allocation3 + $0x8] sm:$0xfe] %v787_v18  ;;  %v788_v21 = vrot.slane %v775_v19, 7  ;;  %v776_v22 = vmax.f32 %v772_v20, 0.0  ;;  %v1180_v19 = vld [vmem:[#allocation4 + $0x5e0] sm:$0xff]  ;;  %v1179_v20 = vld [vmem:[#allocation4 + $0x5d8] sm:$0xff] }
 0x16c   : > { %v2279_v23 = vsel %vm257_vm1, %v786_v14, %v788_v21  ;;  %802 = vst [vmem:[#allocation3 + $0x20] sm:$0x1] %v788_v21  ;;  %v790_v24 = vrot.slane %v776_v22, 7  ;;  %v1121_v14 = vld [vmem:[#allocation4 + $0x408] sm:$0xff]  ;;  %v1178_v21 = vld [vmem:[#allocation4 + $0x5d0] sm:$0xff] }
 0x16d   : > { %v948_v34 = vrot.slane %v2279_v23, 1  ;;  %v1177_v22 = vld [vmem:[#allocation4 + $0x5c8] sm:$0xff] }
 0x16e   : > { %v2282_v25 = vsel %vm257_vm1, %v787_v18, %v790_v24  ;;  %803 = vst [vmem:[#allocation3 + $0x28] sm:$0x1] %v790_v24  ;;  %v1181_v18 = vld [vmem:[#allocation4 + $0x5e8] sm:$0xff]  ;;  %v1176_v24 = vld [vmem:[#allocation4 + $0x5c0] sm:$0xff] }
 0x16f   : > { %v872_v26 = vld [vmem:[#allocation3] sm:$0xfe]  ;;  %v951_v32 = vrot.slane %v2282_v25, 1  ;;  %v1192_v48 = vrot.slane %v2282_v25, 2 }
 0x170   : > { %v947_v29 = vrot.slane %v872_v26, 1  ;;  %v804_v30 = vld [vmem:[#allocation3] sm:$0xff]  ;;  %v1175_v26 = vld [vmem:[#allocation4 + $0x5b8] sm:$0xff] }
 0x171   : > { %v805_v27 = vld [vmem:[#allocation3 + $0x8] sm:$0xff] }
 0x172   : > { %v873_v28 = vld [vmem:[#allocation3 + $0x8] sm:$0xfe]  ;;  %1102 = vmatprep.mubr.f32.mxu0 %v805_v27  ;;  %v949_v39 = vsel %vm419_vm2, %v947_v29, %v948_v34  ;;  %v1174_v27 = vld [vmem:[#allocation4 + $0x5b0] sm:$0xff]  ;;  %v1172_v29 = vld [vmem:[#allocation4 + $0x5a0] sm:$0xff] }
 0x173   : > { %v950_v33 = vrot.slane %v873_v28, 1  ;;  %1103 = vmatmul.mubr.f32.vlgmr.msra.gmra.mxu0 %v804_v30  ;;  %v874_v35 = vld [vmem:[#allocation3 + $0x20] sm:$0x1]  ;;  %v1116_v36 = vld [vmem:[#allocation3 + $0x8] sm:$0xfc]  ;;  %v1173_v28 = vld [vmem:[#allocation4 + $0x5a8] sm:$0xff] }
 0x174   : > { %1108 = vmatprep.mubr.f32.mxu0 %v2282_v25  ;;  %v953_v42 = vrot.slane %v874_v35, 1  ;;  %v1191_v45 = vrot.slane %v1116_v36, 2  ;;  %v1171_v30 = vld [vmem:[#allocation4 + $0x598] sm:$0xff]  ;;  %v1166_v36 = vld [vmem:[#allocation4 + $0x570] sm:$0xff] }
 0x175   : > { %v952_v37 = vsel %vm419_vm2, %v950_v33, %v951_v32  ;;  %v875_v40 = vld [vmem:[#allocation3 + $0x28] sm:$0x1]  ;;  %v1169_v33 = vld [vmem:[#allocation4 + $0x588] sm:$0xff] }
 0x176   : > { %1025 = vmatprep.mubr.f32.mxu1 %v952_v37  ;;  %v955_v44 = vrot.slane %v875_v40, 1  ;;  %v954_v51 = vsel %vm419_vm2, %v948_v34, %v953_v42  ;;  %v1193_v54 = vsel %vm661_vm3, %v1191_v45, %v1192_v48  ;;  %v1168_v34 = vld [vmem:[#allocation4 + $0x580] sm:$0xff]  ;;  %v1167_v35 = vld [vmem:[#allocation4 + $0x578] sm:$0xff]  ;;  %v1165_v37 = vld [vmem:[#allocation4 + $0x568] sm:$0xff] }
 0x177   : > { %1026 = vmatmul.mubr.f32.vlgmr.msra.gmra.mxu1 %v949_v39  ;;  %1109 = vmatmul.mubr.f32.gmra.mxu0 %v2279_v23  ;;  %v1163_v39 = vld [vmem:[#allocation4 + $0x558] sm:$0xff]  ;;  %v1162_v40 = vld [vmem:[#allocation4 + $0x550] sm:$0xff]  ;;  %v1160_v42 = vld [vmem:[#allocation4 + $0x540] sm:$0xff] }
 0x178   : > { %1203 = vmatpush1.msra.mxu1 %v1150_v38  ;;  %v956_v49 = vsel %vm419_vm2, %v951_v32, %v955_v44  ;;  %v1170_v32 = vld [vmem:[#allocation4 + $0x590] sm:$0xff]  ;;  %v1164_v38 = vld [vmem:[#allocation4 + $0x560] sm:$0xff]  ;;  %v1159_v44 = vld [vmem:[#allocation4 + $0x538] sm:$0xff] }
 0x179   : > { %1204 = vmatprep.subr.mxu1 %v1149_v41  ;;  %1031 = vmatprep.mubr.f32.mxu1 %v956_v49  ;;  %v1161_v41 = vld [vmem:[#allocation4 + $0x548] sm:$0xff]  ;;  %v1115_v49 = vld [vmem:[#allocation3] sm:$0xfc] }
 0x17a   : > { %1205 = vmatpush1.msra.mxu1 %v1148_v46  ;;  %v1158_v46 = vld [vmem:[#allocation4 + $0x530] sm:$0xff]  ;;  %v1157_v45 = vld [vmem:[#allocation4 + $0x528] sm:$0xff] }
 0x17b   : > { %1206 = vmatprep.subr.mxu1 %v1147_v47  ;;  %1032 = vmatmul.mubr.f32.gmra.mxu1 %v954_v51  ;;  %v1156_v47 = vld [vmem:[#allocation4 + $0x520] sm:$0xff]  ;;  %v1118_v51 = vld [vmem:[#allocation3 + $0x28] sm:$0x3] }
 0x17c   : > { %1207 = vmatpush1.msra.mxu1 %v1146_v50  ;;  %1266 = vmatprep.mubr.f32.mxu1 %v1193_v54  ;;  %v1155_v50 = vld [vmem:[#allocation4 + $0x518] sm:$0xff]  ;;  %v1153_v54 = vld [vmem:[#allocation4 + $0x508] sm:$0xff] }
 0x17d   : > { %1208 = vmatprep.subr.mxu1 %v1145_v52  ;;  %v1154_v52 = vld [vmem:[#allocation4 + $0x510] sm:$0xff] }
 0x17e   : > { %1209 = vmatpush1.msra.mxu1 %v1144_v55  ;;  %v1188_v55 = vrot.slane %v1115_v49, 2 }
 0x17f   : > { %1210 = vmatprep.subr.mxu1 %v1143_v56  ;;  %v1152_v56 = vld [vmem:[#allocation4 + $0x500] sm:$0xff] }
 0x180   : > { %1211 = vmatpush1.msra.mxu1 %v1142_v31  ;;  %v1196_v31 = vrot.slane %v1118_v51, 2 }
 0x181   : > { %1212 = vmatprep.subr.mxu1 %v1141_v57  ;;  %v1117_v57 = vld [vmem:[#allocation3 + $0x20] sm:$0x3] }
 0x182   : > { %1213 = vmatpush1.msra.mxu1 %v1140_v59  ;;  %v1189_v59 = vrot.slane %v2279_v23, 2 }
 0x183   : > { %1214 = vmatprep.subr.mxu1 %v1139_v60 }
 0x184   : > { %1215 = vmatpush1.msra.mxu1 %v1138_v61  ;;  %v1190_v60 = vsel %vm661_vm3, %v1188_v55, %v1189_v59  ;;  %v1194_v61 = vrot.slane %v1117_v57, 2 }
 0x185   : > { %1216 = vmatprep.subr.mxu1 %v1137_v62  ;;  %v1197_v62 = vsel %vm661_vm3, %v1192_v48, %v1196_v31 }
 0x186   : > { %1217 = vmatpush1.msra.mxu1 %v1136_v0  ;;  %v1195_v0 = vsel %vm661_vm3, %v1189_v59, %v1194_v61 }
 0x187   : > { %1218 = vmatprep.subr.mxu1 %v1135_v63 }
 0x188   : > { %1219 = vmatpush1.msra.mxu1 %v1134_v1 }
 0x189   : > { %1220 = vmatprep.subr.mxu1 %v1133_v2 }
 0x18a   : > { %1221 = vmatpush1.msra.mxu1 %v1132_v3 }
 0x18b   : > { %1222 = vmatprep.subr.mxu1 %v1131_v4  ;;  %v1283_v4 = vld [vmem:[%s2325_s4] sm:$0x3] }
 0x18c   : > { %1223 = vmatpush1.msra.mxu1 %v1130_v5  ;;  %v1288_v25 = vrot.slane %v1283_v4, %v761_v43 }
 0x18d   : > { %1224 = vmatprep.subr.mxu1 %v1129_v6 }
 0x18e   : > { %1225 = vmatpush1.msra.mxu1 %v1128_v7 }
 0x18f   : > { %1226 = vmatprep.subr.mxu1 %v1127_v8 }
 0x190   : > { %1227 = vmatpush1.msra.mxu1 %v1126_v9 }
 0x191   : > { %1228 = vmatprep.subr.mxu1 %v1125_v10  ;;  %v1292_v10 = vrot.slane %v1283_v4, %v765_v58 }
 0x192   : > { %1229 = vmatpush1.msra.mxu1 %v1124_v11 }
 0x193   : > { %1230 = vmatprep.subr.mxu1 %v1123_v12 }
 0x194   : > { %1231 = vmatpush1.msra.mxu1 %v1122_v13 }
 0x195   : > { %1232 = vmatprep.subr.mxu1 %v1121_v14 }
 0x196   : > { %1233 = vmatpush1.msra.mxu1 %v1120_v15 }
 0x197   : > { %1234 = vmatprep.subr.mxu1 %v1183_v16 }
 0x198   : > { %1235 = vmatpush2.msra.mxu1 %v1182_v17 }
 0x199   : > { %1236 = vmatprep.subr.mxu1 %v1181_v18  ;;  %v1543_v18 = vld [vmem:[%s1912_s13] sm:$0xff] }
 0x19a   : > { %1237 = vmatpush2.msra.mxu1 %v1180_v19 }
 0x19b   : > { %1238 = vmatprep.subr.mxu1 %v1179_v20 }
 0x19c   : > { %1239 = vmatpush2.msra.mxu1 %v1178_v21  ;;  %v1544_v21 = vld [vmem:[%s1912_s13 + $0x8] sm:$0xff] }
 0x19d   : > { %1240 = vmatprep.subr.mxu1 %v1177_v22 }
 0x19e   : > { %1241 = vmatpush2.msra.mxu1 %v1176_v24 }
 0x19f   : > { %1242 = vmatprep.subr.mxu1 %v1175_v26 }
 0x1a0   : > { %1243 = vmatpush2.msra.mxu1 %v1174_v27 }
 0x1a1   : > { %1244 = vmatprep.subr.mxu1 %v1173_v28  ;;  %v1545_v28 = vld [vmem:[%s1912_s13 + $0x10] sm:$0xff] }
 0x1a2   : > { %1245 = vmatpush2.msra.mxu1 %v1172_v29 }
 0x1a3   : > { %1246 = vmatprep.subr.mxu1 %v1171_v30 }
 0x1a4   : > { %1247 = vmatpush2.msra.mxu1 %v1170_v32 }
 0x1a5   : > { %1248 = vmatprep.subr.mxu1 %v1169_v33  ;;  %v1546_v33 = vld [vmem:[%s1912_s13 + $0x18] sm:$0xff] }
 0x1a6   : > { %1249 = vmatpush2.msra.mxu1 %v1168_v34 }
 0x1a7   : > { %1250 = vmatprep.subr.mxu1 %v1167_v35 }
 0x1a8   : > { %1251 = vmatpush2.msra.mxu1 %v1166_v36 }
 0x1a9   : > { %1252 = vmatprep.subr.mxu1 %v1165_v37 }
 0x1aa   : > { %1253 = vmatpush2.msra.mxu1 %v1164_v38 }
 0x1ab   : > { %1254 = vmatprep.subr.mxu1 %v1163_v39 }
 0x1ac   : > { %1255 = vmatpush2.msra.mxu1 %v1162_v40 }
 0x1ad   : > { %1256 = vmatprep.subr.mxu1 %v1161_v41 }
 0x1ae   : > { %1257 = vmatpush2.msra.mxu1 %v1160_v42 }
 0x1af   : > { %1258 = vmatprep.subr.mxu1 %v1159_v44 }
 0x1b0   : > { %1259 = vmatpush2.msra.mxu1 %v1158_v46 }
 0x1b1   : > { %1260 = vmatprep.subr.mxu1 %v1157_v45 }
 0x1b2   : > { %1261 = vmatpush2.msra.mxu1 %v1156_v47 }
 0x1b3   : > { %1262 = vmatprep.subr.mxu1 %v1155_v50 }
 0x1b4   : > { %1263 = vmatpush2.msra.mxu1 %v1154_v52 }
 0x1b5   : > { %1264 = vmatprep.subr.mxu1 %v1153_v54 }
 0x1b6   : > { %1265 = vmatpush2.msra.mxu1 %v1152_v56 }
 0x1b7   : > { %1267 = vmatmul.mubr.f32.vlgmr.msra.gmra.mxu1 %v1190_v60 }
 0x1b8   : > { %1272 = vmatprep.mubr.f32.mxu1 %v1197_v62 }
 0x1bb   : > { %1273 = vmatmul.mubr.f32.gmra.mxu1 %v1195_v0 }
 0x233   : > { %v1104_v2 = vpop.f32.mrf.mxu0 }
 0x235   : > { %v1106_v23 = vpop.f32.mrf.mxu0 }
 0x237   : > { %v1027_v63 = vpop.f32.mrf.mxu1  ;;  %v1110_v48 = vpop.f32.mrf.mxu0 }
 0x238   : > { %v1105_v6 = vadd.f32 %v1104_v2, %v1027_v63 }
 0x239   : > { %v1029_v1 = vpop.f32.mrf.mxu1  ;;  %v1112_v15 = vpop.f32.mrf.mxu0 }
 0x23a   : > { %v1107_v8 = vadd.f32 %v1106_v23, %v1029_v1 }
 0x23b   : > { %v1033_v3 = vpop.f32.mrf.mxu1 }
 0x23c   : > { %v1111_v12 = vadd.f32 %v1110_v48, %v1033_v3 }
 0x23d   : > { %v1035_v5 = vpop.f32.mrf.mxu1 }
 0x23e   : > { %v1113_v17 = vadd.f32 %v1112_v15, %v1035_v5 }
 0x277   : > { %v1268_v7 = vpop.f32.mrf.mxu1 }
 0x278   : > { %v1279_v9 = vadd.f32 %v1268_v7, %v1105_v6 }
 0x279   : > { %v1270_v11 = vpop.f32.mrf.mxu1 }
 0x27a   : > { %v1295_v13 = vadd.f32 %v1288_v25, %v1279_v9  ;;  %v1280_v14 = vadd.f32 %v1270_v11, %v1107_v8 }
 0x27b   : > { %v1274_v16 = vpop.f32.mrf.mxu1 }
 0x27c   : > { %v1299_v19 = vadd.f32 %v1543_v18, %v1295_v13  ;;  %v1296_v43 = vadd.f32 %v1292_v10, %v1280_v14  ;;  %v1281_v20 = vadd.f32 %v1274_v16, %v1111_v12 }
 0x27d   : > { %v1276_v53 = vpop.f32.mrf.mxu1 }
 0x27e   : > { %v1303_v58 = vmax.f32 %v1299_v19, 0.0  ;;  %v1300_v22 = vadd.f32 %v1544_v21, %v1296_v43  ;;  %v1297_v24 = vadd.f32 %v1288_v25, %v1281_v20  ;;  %v1282_v26 = vadd.f32 %v1276_v53, %v1113_v17 }
 0x280   : > { %1307 = vst [vmem:[%s239_s29] sm:$0xff] %v1303_v58  ;;  %v1304_v27 = vmax.f32 %v1300_v22, 0.0  ;;  %v1301_v29 = vadd.f32 %v1545_v28, %v1297_v24  ;;  %v1298_v30 = vadd.f32 %v1292_v10, %v1282_v26 }
 0x282   : > { %1308 = vst [vmem:[%s239_s29 + $0x8] sm:$0xff] %v1304_v27  ;;  %v1305_v32 = vmax.f32 %v1301_v29, 0.0  ;;  %v1302_v34 = vadd.f32 %v1546_v33, %v1298_v30 }
 0x284   : > { %1309 = vst [vmem:[%s239_s29 + $0x10] sm:$0xff] %v1305_v32  ;;  %v1306_v35 = vmax.f32 %v1302_v34, 0.0 }
 0x286   : > { %1310 = vst [vmem:[%s239_s29 + $0x18] sm:$0xff] %v1306_v35 }
 0x287 PF: > { %s16_s18 = sadd.s32 1, %s1583_s18  }
 0x288   : > { %p13_p1 = scmp.ge.s32.totalorder %s16_s18, 4  }
 0x28a   :  { %15 = sbr.rel (!%p13_p1) target bundleno = 1 (0x1), region = 81 }
 0x28f   :  { %1332 = vsyncpa [#allocation5], 1 }
 0x290   :  { %1334 = vsyncpa [#allocation5 + $0x1], 1 }

</bundles_post_ra>
